<compile_context>
chip_gen: v7x
topology: tpu7x:2x2x1
jax: 0.10.0
libtpu: 0.0.40
codegen_flags: <defaults>
</compile_context>

<pallas_src>
import jax
import jax.numpy as jnp
from jax.experimental import pallas as pl
from jax.experimental.pallas import tpu as pltpu


def _round_up(x: int, m: int) -> int:
    return ((x + m - 1) // m) * m


def _make_jkmlp_kernel(num_layers: int, hid_p: int, compute_dtype):
    """Kernel for a fixed (static) number of layers.

    Ref order: x, (Wf_0, bf_0), ..., (Wf_{L-2}, bf_{L-2}), W_last, b_last, out
    Non-final layers use fused weights of width hid_p + out_p:
      columns [0, hid_p)         -> hidden pre-activation
      columns [hid_p, hid_p+out) -> JK projection of that pre-activation
    """

    def kernel(*refs):
        x_ref = refs[0]
        o_ref = refs[-1]
        params = refs[1:-1]

        h = x_ref[...]
        acc = None
        for i in range(num_layers - 1):
            w_ref = params[2 * i]
            b_ref = params[2 * i + 1]
            # One fused MXU matmul per non-final layer (hidden + JK projection).
            y = jnp.dot(h, w_ref[...], preferred_element_type=jnp.float32) + b_ref[...]
            proj = y[:, hid_p:]                       # JK projection (f32)
            acc = proj if acc is None else acc + proj
            # act_first=False, norm=None -> relu after linear; dropout=0/eval -> id.
            h = jnp.maximum(y[:, :hid_p], 0.0).astype(compute_dtype)

        w_ref = params[-2]
        b_ref = params[-1]
        y = jnp.dot(h, w_ref[...], preferred_element_type=jnp.float32) + b_ref[...]
        out = y if acc is None else acc + y           # num_layers==1: sum([]) == 0
        o_ref[...] = out.astype(o_ref.dtype)

    return kernel


def _prepare_fused_params(layer_params, jk_params, in_p, hid_p, out_p, compute_dtype):
    """Host-side: fold W_jk/b_jk into each non-final layer and zero-pad to lanes.

    Returns list of (W, b) with W in compute_dtype and b kept in f32 (added to
    the f32 MXU accumulator in-kernel).
    """
    num_layers = len(layer_params)
    w_jk, b_jk = jk_params
    b_jk = b_jk.reshape(-1)
    fused = []

    for i, (w, b) in enumerate(layer_params[:-1]):
        b = b.reshape(-1)
        w_proj = w @ w_jk                  # (d_in_i, out_ch)
        b_proj = b @ w_jk + b_jk           # (out_ch,)
        d_in, d_hid = w.shape
        d_in_pad = in_p if i == 0 else hid_p
        wf = jnp.zeros((d_in_pad, hid_p + out_p), jnp.float32)
        wf = wf.at[:d_in, :d_hid].set(w)
        wf = wf.at[:d_in, hid_p:hid_p + w_proj.shape[1]].set(w_proj)
        bf = jnp.zeros((1, hid_p + out_p), jnp.float32)
        bf = bf.at[0, :d_hid].set(b)
        bf = bf.at[0, hid_p:hid_p + b_proj.shape[0]].set(b_proj)
        fused.append((wf.astype(compute_dtype), bf))

    # Final layer (no fusion).
    w, b = layer_params[-1]
    b = b.reshape(-1)
    d_in, d_out = w.shape
    d_in_pad = hid_p if num_layers > 1 else in_p
    wl = jnp.zeros((d_in_pad, out_p), jnp.float32).at[:d_in, :d_out].set(w)
    bl = jnp.zeros((1, out_p), jnp.float32).at[0, :d_out].set(b)
    fused.append((wl.astype(compute_dtype), bl))
    return fused


def jkmlp_forward(x, layer_params, jk_params, *, tile_n=256, compute_dtype=jnp.float32):
    """Run the JKMLP forward pass with a single Pallas TPU kernel.

    x:            (N, in_channels) float32
    layer_params: list of (W_i, b_i) with W_i (in_i, out_i), b_i (out_i,)
                  (weights already transposed vs. PyTorch, i.e. h = x @ W + b)
    jk_params:    (W_jk, b_jk) with W_jk (hidden, out_channels), b_jk (out_channels,)
    compute_dtype: jnp.float32 or jnp.bfloat16 (MXU inputs; accumulation is f32)
    """
    num_layers = len(layer_params)
    assert num_layers >= 1
    n, in_ch = x.shape
    hidden = layer_params[0][0].shape[1]
    out_ch = layer_params[-1][0].shape[1]

    # Lane-dense padding of every feature axis (weights are tiny; free).
    in_p = _round_up(in_ch, 128)
    hid_p = _round_up(hidden, 128)
    out_p = _round_up(out_ch, 128)
    n_p = _round_up(n, tile_n)

    x_pad = jnp.zeros((n_p, in_p), compute_dtype).at[:n, :in_ch].set(
        x.astype(compute_dtype))
    fused = _prepare_fused_params(layer_params, jk_params, in_p, hid_p, out_p,
                                  compute_dtype)

    in_specs = [pl.BlockSpec((tile_n, in_p), lambda i: (i, 0))]
    flat_params = []
    for w, b in fused:
        in_specs.append(pl.BlockSpec(w.shape, lambda i: (0, 0)))
        in_specs.append(pl.BlockSpec(b.shape, lambda i: (0, 0)))
        flat_params += [w, b]
    out_spec = pl.BlockSpec((tile_n, out_p), lambda i: (i, 0))   # lane-dense output

    # Advisory cost estimate for XLA's scheduler.
    flops = 2 * n_p * sum(int(w.shape[0]) * int(w.shape[1]) for w, _ in fused)
    bytes_accessed = (
        x_pad.size * x_pad.dtype.itemsize
        + n_p * out_p * 4
        + sum(w.size * w.dtype.itemsize + b.size * b.dtype.itemsize
              for w, b in fused)
    )
    cost = pl.CostEstimate(flops=flops, transcendentals=0,
                           bytes_accessed=bytes_accessed)

    fn = pl.pallas_call(
        _make_jkmlp_kernel(num_layers, hid_p, compute_dtype),
        out_shape=jax.ShapeDtypeStruct((n_p, out_p), jnp.float32),
        grid_spec=pltpu.PrefetchScalarGridSpec(
            num_scalar_prefetch=0,
            grid=(n_p // tile_n,),
            in_specs=in_specs,
            out_specs=out_spec,
        ),
        compiler_params=pltpu.CompilerParams(
            # Row grid is embarrassingly parallel -> sharded across TensorCores
            # (2 TCs on v7x).  VMEM use per step is ~1 MiB, no limit raise needed.
            dimension_semantics=("parallel",),
        ),
        cost_estimate=cost,
    )
    out = fn(x_pad, *flat_params)
    return out[:n, :out_ch]


def jkmlp_reference(x, layer_params, jk_params):
    """Pure-JAX reference mirroring PyTorch JKMLP.forward (eval mode)."""
    num_layers = len(layer_params)
    w_jk, b_jk = jk_params
    b_jk = b_jk.reshape(-1)
    h = x
    acc = 0.0                                  # sum([]) == 0, matches PyTorch
    for i, (w, b) in enumerate(layer_params):
        h = h @ w + b.reshape(-1)
        if i == num_layers - 1:
            return acc + h
        acc = acc + (h @ w_jk + b_jk)
        h = jnp.maximum(h, 0.0)


def init_params(key, in_channels, hidden_channels, out_channels, num_layers):
    """Deterministic synthetic parameters (Glorot-uniform-ish, nonzero biases)."""
    dims = [in_channels] + [hidden_channels] * (num_layers - 1) + [out_channels]
    keys = jax.random.split(key, 2 * num_layers + 2)
    layer_params = []
    for i in range(num_layers):
        fan_in, fan_out = dims[i], dims[i + 1]
        limit = (6.0 / (fan_in + fan_out)) ** 0.5
        w = jax.random.uniform(keys[2 * i], (fan_in, fan_out), jnp.float32,
                               -limit, limit)
        b = jax.random.uniform(keys[2 * i + 1], (fan_out,), jnp.float32,
                               -0.1, 0.1)
        layer_params.append((w, b))
    limit = (6.0 / (hidden_channels + out_channels)) ** 0.5
    w_jk = jax.random.uniform(keys[-2], (hidden_channels, out_channels),
                              jnp.float32, -limit, limit)
    b_jk = jax.random.uniform(keys[-1], (out_channels,), jnp.float32, -0.1, 0.1)
    return layer_params, (w_jk, b_jk)


if __name__ == "__main__":
    # Node-feature matrix (N, in_channels): in=4, hidden=32, out=16, 3 layers.
    N, IN_CH, HID_CH, OUT_CH, NUM_LAYERS = 512, 4, 32, 16, 3

    key = jax.random.PRNGKey(0)
    kx, kp = jax.random.split(key)
    x = jax.random.normal(kx, (N, IN_CH), jnp.float32)
    layer_params, jk_params = init_params(kp, IN_CH, HID_CH, OUT_CH, NUM_LAYERS)
    ref = jkmlp_reference(x, layer_params, jk_params)

    # f32 compute path: tight correctness check.
    out = jax.block_until_ready(
        jkmlp_forward(x, layer_params, jk_params, tile_n=256,
                      compute_dtype=jnp.float32))
    assert out.shape == (N, OUT_CH), out.shape
    assert jnp.allclose(out, ref, atol=1e-4, rtol=1e-4), "f32 mismatch vs reference"

    # bf16 MXU path (f32 accumulation): looser tolerance.
    out_bf16 = jax.block_until_ready(
        jkmlp_forward(x, layer_params, jk_params, tile_n=256,
                      compute_dtype=jnp.bfloat16))
    assert jnp.allclose(out_bf16, ref, atol=1e-1, rtol=1e-1), "bf16 mismatch vs reference"

    # num_layers == 1 edge case (JKMLP degenerates to the last linear layer).
    lp1, jk1 = init_params(kp, IN_CH, HID_CH, OUT_CH, 1)
    out1 = jax.block_until_ready(
        jkmlp_forward(x, lp1, jk1, tile_n=256, compute_dtype=jnp.float32))
    ref1 = jkmlp_reference(x, lp1, jk1)
    assert jnp.allclose(out1, ref1, atol=1e-4, rtol=1e-4), "L=1 mismatch vs reference"

    # TODO(synk): dropout>0 in training mode and norm layers are not implemented
    # (module defaults are dropout=0 / norm=None, which this kernel matches).
    print("KERNEL_OK")
</pallas_src>

<mosaic_0001>
module attributes {stable_mosaic.version = 11 : i64} {
  func.func @kernel(%arg0: i32, %arg1: memref<256x128xf32, #tpu.memory_space<vmem>>, %arg2: memref<128x256xf32, #tpu.memory_space<vmem>>, %arg3: memref<1x256xf32, #tpu.memory_space<vmem>>, %arg4: memref<128x256xf32, #tpu.memory_space<vmem>>, %arg5: memref<1x256xf32, #tpu.memory_space<vmem>>, %arg6: memref<128x128xf32, #tpu.memory_space<vmem>>, %arg7: memref<1x128xf32, #tpu.memory_space<vmem>>, %arg8: memref<256x128xf32, #tpu.memory_space<vmem>>) attributes {dimension_semantics = [#tpu.dimension_semantics<parallel>], iteration_bounds = array<i64: 2>, scalar_prefetch = 0 : i64, scratch_operands = 0 : i64, tpu.core_type = #tpu.core_type<tc>, window_params = [{transform_indices = @transform_0, window_bounds = array<i64: 256, 128>}, {pipeline_mode = #tpu.pipeline_mode<synchronous>, transform_indices = @transform_1, window_bounds = array<i64: 128, 256>}, {pipeline_mode = #tpu.pipeline_mode<synchronous>, transform_indices = @transform_2, window_bounds = array<i64: 1, 256>}, {pipeline_mode = #tpu.pipeline_mode<synchronous>, transform_indices = @transform_3, window_bounds = array<i64: 128, 256>}, {pipeline_mode = #tpu.pipeline_mode<synchronous>, transform_indices = @transform_4, window_bounds = array<i64: 1, 256>}, {pipeline_mode = #tpu.pipeline_mode<synchronous>, transform_indices = @transform_5, window_bounds = array<i64: 128, 128>}, {pipeline_mode = #tpu.pipeline_mode<synchronous>, transform_indices = @transform_6, window_bounds = array<i64: 1, 128>}, {transform_indices = @transform_7, window_bounds = array<i64: 256, 128>}]} {
    %c0 = arith.constant 0 : index
    %c0_0 = arith.constant 0 : index
    %0 = vector.load %arg1[%c0, %c0_0] : memref<256x128xf32, #tpu.memory_space<vmem>>, vector<256x128xf32>
    %c0_1 = arith.constant 0 : index
    %c0_2 = arith.constant 0 : index
    %1 = vector.load %arg2[%c0_1, %c0_2] : memref<128x256xf32, #tpu.memory_space<vmem>>, vector<128x256xf32>
    %cst = arith.constant dense<0.000000e+00> : vector<256x256xf32>
    %2 = tpu.matmul %0, %1, %cst {dimension_numbers = #tpu.dot_dimension_numbers<[1], [0], [0], [1], [0, 0, 1, 1], [], []>} : vector<256x128xf32>, vector<128x256xf32>, vector<256x256xf32> -> vector<256x256xf32>
    %c0_3 = arith.constant 0 : index
    %c0_4 = arith.constant 0 : index
    %3 = vector.load %arg3[%c0_3, %c0_4] : memref<1x256xf32, #tpu.memory_space<vmem>>, vector<1x256xf32>
    %4 = vector.broadcast %3 : vector<1x256xf32> to vector<256x256xf32>
    %5 = arith.addf %2, %4 : vector<256x256xf32>
    %6 = vector.extract_strided_slice %5 {offsets = [0, 128], sizes = [256, 128], strides = [1, 1]} : vector<256x256xf32> to vector<256x128xf32>
    %7 = vector.extract_strided_slice %5 {offsets = [0, 0], sizes = [256, 128], strides = [1, 1]} : vector<256x256xf32> to vector<256x128xf32>
    %cst_5 = arith.constant 0.000000e+00 : f32
    %8 = vector.broadcast %cst_5 : f32 to vector<256x128xf32>
    %9 = arith.maximumf %7, %8 : vector<256x128xf32>
    %c0_6 = arith.constant 0 : index
    %c0_7 = arith.constant 0 : index
    %10 = vector.load %arg4[%c0_6, %c0_7] : memref<128x256xf32, #tpu.memory_space<vmem>>, vector<128x256xf32>
    %cst_8 = arith.constant dense<0.000000e+00> : vector<256x256xf32>
    %11 = tpu.matmul %9, %10, %cst_8 {dimension_numbers = #tpu.dot_dimension_numbers<[1], [0], [0], [1], [0, 0, 1, 1], [], []>} : vector<256x128xf32>, vector<128x256xf32>, vector<256x256xf32> -> vector<256x256xf32>
    %c0_9 = arith.constant 0 : index
    %c0_10 = arith.constant 0 : index
    %12 = vector.load %arg5[%c0_9, %c0_10] : memref<1x256xf32, #tpu.memory_space<vmem>>, vector<1x256xf32>
    %13 = vector.broadcast %12 : vector<1x256xf32> to vector<256x256xf32>
    %14 = arith.addf %11, %13 : vector<256x256xf32>
    %15 = vector.extract_strided_slice %14 {offsets = [0, 128], sizes = [256, 128], strides = [1, 1]} : vector<256x256xf32> to vector<256x128xf32>
    %16 = arith.addf %6, %15 : vector<256x128xf32>
    %17 = vector.extract_strided_slice %14 {offsets = [0, 0], sizes = [256, 128], strides = [1, 1]} : vector<256x256xf32> to vector<256x128xf32>
    %cst_11 = arith.constant 0.000000e+00 : f32
    %18 = vector.broadcast %cst_11 : f32 to vector<256x128xf32>
    %19 = arith.maximumf %17, %18 : vector<256x128xf32>
    %c0_12 = arith.constant 0 : index
    %c0_13 = arith.constant 0 : index
    %20 = vector.load %arg6[%c0_12, %c0_13] : memref<128x128xf32, #tpu.memory_space<vmem>>, vector<128x128xf32>
    %cst_14 = arith.constant dense<0.000000e+00> : vector<256x128xf32>
    %21 = tpu.matmul %19, %20, %cst_14 {dimension_numbers = #tpu.dot_dimension_numbers<[1], [0], [0], [1], [0, 0, 1, 1], [], []>} : vector<256x128xf32>, vector<128x128xf32>, vector<256x128xf32> -> vector<256x128xf32>
    %c0_15 = arith.constant 0 : index
    %c0_16 = arith.constant 0 : index
    %22 = vector.load %arg7[%c0_15, %c0_16] : memref<1x128xf32, #tpu.memory_space<vmem>>, vector<1x128xf32>
    %23 = vector.broadcast %22 : vector<1x128xf32> to vector<256x128xf32>
    %24 = arith.addf %21, %23 : vector<256x128xf32>
    %25 = arith.addf %16, %24 : vector<256x128xf32>
    %c0_17 = arith.constant 0 : index
    %c0_18 = arith.constant 0 : index
    %26 = vector.load %arg8[%c0_17, %c0_18] : memref<256x128xf32, #tpu.memory_space<vmem>>, vector<256x128xf32>
    tpu.vector_store %arg8[%c0_17, %c0_18], %25 {strides = array<i32>} : memref<256x128xf32, #tpu.memory_space<vmem>>, vector<256x128xf32>,
    return
  }
  func.func @transform_0(%arg0: i32) -> (i32, i32) {
    %c0_i32 = arith.constant 0 : i32
    %c0_i32_0 = arith.constant 0 : i32
    return %arg0, %c0_i32 : i32, i32
  }
  func.func @transform_1(%arg0: i32) -> (i32, i32) {
    %c0_i32 = arith.constant 0 : i32
    %c0_i32_0 = arith.constant 0 : i32
    %c0_i32_1 = arith.constant 0 : i32
    return %c0_i32, %c0_i32_0 : i32, i32
  }
  func.func @transform_2(%arg0: i32) -> (i32, i32) {
    %c0_i32 = arith.constant 0 : i32
    %c0_i32_0 = arith.constant 0 : i32
    %c0_i32_1 = arith.constant 0 : i32
    return %c0_i32, %c0_i32_0 : i32, i32
  }
  func.func @transform_3(%arg0: i32) -> (i32, i32) {
    %c0_i32 = arith.constant 0 : i32
    %c0_i32_0 = arith.constant 0 : i32
    %c0_i32_1 = arith.constant 0 : i32
    return %c0_i32, %c0_i32_0 : i32, i32
  }
  func.func @transform_4(%arg0: i32) -> (i32, i32) {
    %c0_i32 = arith.constant 0 : i32
    %c0_i32_0 = arith.constant 0 : i32
    %c0_i32_1 = arith.constant 0 : i32
    return %c0_i32, %c0_i32_0 : i32, i32
  }
  func.func @transform_5(%arg0: i32) -> (i32, i32) {
    %c0_i32 = arith.constant 0 : i32
    %c0_i32_0 = arith.constant 0 : i32
    %c0_i32_1 = arith.constant 0 : i32
    return %c0_i32, %c0_i32_0 : i32, i32
  }
  func.func @transform_6(%arg0: i32) -> (i32, i32) {
    %c0_i32 = arith.constant 0 : i32
    %c0_i32_0 = arith.constant 0 : i32
    %c0_i32_1 = arith.constant 0 : i32
    return %c0_i32, %c0_i32_0 : i32, i32
  }
  func.func @transform_7(%arg0: i32) -> (i32, i32) {
    %c0_i32 = arith.constant 0 : i32
    %c0_i32_0 = arith.constant 0 : i32
    return %arg0, %c0_i32 : i32, i32
  }
}

</mosaic_0001>

<bundles_post_ra>
// kernel: tpu_custom_call.1
= control target key start
LH: loop header
LB: loop body
LE: loop exit
PB: predicated region body
PF: predicated region fallthrough
CT: control target
= control target key end

     0   :  { %12 = vsyncpa [#allocation3], 0  ;;  %s2899_s0 = inlined_call_operand.hbm [shape: f32[512,128], index: 0, kind: input, shape index: {}]   ;;  %s2900_s1 = inlined_call_operand.hbm [shape: f32[128,256], index: 1, kind: input, shape index: {}]   ;;  %s2901_s2 = inlined_call_operand.vmem [shape: f32[1,256], index: 2, kind: input, shape index: {}]   ;;  %s2902_s3 = inlined_call_operand.hbm [shape: f32[128,256], index: 3, kind: input, shape index: {}]   ;;  %s2903_s4 = inlined_call_operand.vmem [shape: f32[1,256], index: 4, kind: input, shape index: {}]   ;;  %s2904_s5 = inlined_call_operand.hbm [shape: f32[128,128], index: 5, kind: input, shape index: {}]   ;;  %s2905_s6 = inlined_call_operand.vmem [shape: f32[1,128], index: 6, kind: input, shape index: {}]   ;;  %s2906_s7 = inlined_call_operand.hbm [shape: f32[512,128], index: 7, kind: output, shape index: {}]  }
   0x1   :  { %14 = vsyncpa [#allocation3 + $0x1], 0 }
   0x2   :  { %15 = vsyncpa [#allocation6], 0 }
   0x3   :  { %16 = vsyncpa [#allocation9], 0 }
   0x4   :  { %17 = vsyncpa [#allocation4], 0 }
   0x5   :  { %19 = vsyncpa [#allocation4 + $0x1], 0  ;;  %s2090_s24 = smov 0   ;;  %s2092_s25 = smov 0  }
   0x6   :  { %s2094_s26 = smov 0   ;;  %s2096_s27 = smov 0  }
   0x7 LB: > { %s2111_s28 = sadd.s32 4294967295, %s2036_s27   ;;  %s1501_s29 = sadd.s32 4294967294, %s2036_s27   ;;  %s2036_s27 = sphi %s2096_s27, %s2932_s27   ;;  %s2032_s26 = sphi %s2094_s26, %s2931_s26   ;;  %s2028_s25 = sphi %s2092_s25, %s2930_s25   ;;  %s2024_s24 = sphi %s2090_s24, %s2929_s24  }
   0x8   : > { %p45_p0 = scmp.ne.s32.totalorder %s2028_s25, %s2024_s24  ;;  %p2907_p1 = scmp.eq.s32.totalorder %s2111_s28, 0 }
   0x9   : > { %p201_p3 = scmp.eq.s32.totalorder %s1501_s29, 1  ;;  %p1502_p5 = scmp.ge.s32.totalorder %s2036_s27, 1 }
   0xa   : > { %p2120_p4 = por %p2907_p1, %p45_p0  ;;  %p208_p7 = scmp.lt.s32.totalorder %s2036_s27, 3 }
   0xb   : > { %p2125_p6 = por %p201_p3, %p45_p0  ;;  %s2038_s10 = smov [#allocation5]  }
   0xc   : > { %s2911_s30 = scalar_select %p2120_p4, 1, 0 }
   0xd   : > { %s2912_s8 = scalar_select %p2125_p6, 1, 0 }
   0xe   : > { %p2130_p8 = pnand %p1502_p5, %p208_p7  ;;  %s220_s11 = sshll.u32 %s2038_s10, 4  ;;  %s2134_s11 = int_to_ptr.vmem [resolvable:$true] %s220_s11 }
   0xf   : > { %2913 = sst [smem:[#allocation15_spill]] %s2912_s8  ;;  %s2039_s13 = smov [#allocation7]  }
  0x10   : > { %s2914_s9 = scalar_select %p2130_p8, 1, 0 }
  0x11   : > { %p1780_p9 = pneg %p2130_p8  ;;  %s236_s14 = sshll.u32 %s2039_s13, 4  ;;  %s2145_s14 = int_to_ptr.vmem [resolvable:$true] %s236_s14 }
  0x12   : > { %s2040_s15 = smov [#allocation8]   ;;  %s1848_s19 = scalar_lea.hbm %s2900_s1, 4096 }
  0x13   : > { %p2141_p11 = pnand %p1780_p9, %p2907_p1  ;;  %s2147_s16 = sshll.u32 %s2040_s15, 4  ;;  %s253_s16 = int_to_ptr.vmem [resolvable:$true] %s2147_s16 }
  0x14   : > { %p1849_p12 = scmp.ne.s32.totalorder %s2900_s1, %s1848_s19  ;;  %p1855_p5 = scmp.lt.u32.totalorder %s1848_s19, %s2900_s1 }
  0x15   : > { %p2157_p13 = pneg %p2141_p11 }
  0x17   : > { %p1851_p0 = pnand %p2157_p13, %p1849_p12 }
  0x19   : > { %p1852_p3 = pneg %p1851_p0 }
  0x1b   : > { %p1857_p7 = pnand %p1855_p5, %p1852_p3 }
  0x1d   : > { %1860 = shalt.err (!%p1857_p7)
}
  0x1e   : > { %s1861_s10 = scalar_lea.vmem %s2134_s11, 4096  ;;  %p1869_p2 = scmp.lt.s32.totalorder %s2134_s11, %s2134_s11 }
  0x1f   : > { %p1862_p9 = scmp.ne.s32.totalorder %s2134_s11, %s1861_s10  ;;  %p1870_p6 = scmp.lt.s32.totalorder %s1861_s10, %s1861_s10 }
  0x21   : > { %p1864_p10 = pnand %p1862_p9, %p2157_p13  ;;  %p1871_p12 = por %p1870_p6, %p1869_p2 }
  0x23   : > { %p1865_p1 = pneg %p1864_p10 }
  0x25   : > { %p1872_p0 = pnand %p1871_p12, %p1865_p1 }
  0x27   : > { %1875 = shalt.err (!%p1872_p0)
}
  0x28   : > { %s2041_s13 = smov 256   ;;  %s2042_s15 = smov 16  }
  0x29   : > { %1783 = dma.hbm_to_vmem [thread:$0]  (!%p2141_p11), %s2900_s1, 4096, %s2134_s11, [#allocation6], %s2041_s13, %s2041_s13, %s2042_s15  }
  0x2a   : > { %s1876_s21 = scalar_lea.hbm %s2902_s3, 4096 }
  0x2b   : > { %p1877_p2 = scmp.ne.s32.totalorder %s2902_s3, %s1876_s21  ;;  %p1883_p10 = scmp.lt.u32.totalorder %s1876_s21, %s2902_s3 }
  0x2d   : > { %p1879_p1 = pnand %p1877_p2, %p2157_p13 }
  0x2f   : > { %p1880_p6 = pneg %p1879_p1 }
  0x31   : > { %p1885_p3 = pnand %p1883_p10, %p1880_p6 }
  0x33   : > { %1888 = shalt.err (!%p1885_p3)
}
  0x34   : > { %s1889_s11 = scalar_lea.vmem %s2145_s14, 4096  ;;  %p1897_p12 = scmp.lt.s32.totalorder %s2145_s14, %s2145_s14 }
  0x35   : > { %p1890_p5 = scmp.ne.s32.totalorder %s2145_s14, %s1889_s11  ;;  %p1898_p0 = scmp.lt.s32.totalorder %s1889_s11, %s1889_s11 }
  0x37   : > { %p1892_p7 = pnand %p1890_p5, %p2157_p13  ;;  %p1899_p2 = por %p1898_p0, %p1897_p12 }
  0x39   : > { %p1893_p9 = pneg %p1892_p7 }
  0x3b   : > { %p1900_p1 = pnand %p1899_p2, %p1893_p9 }
  0x3d   : > { %1903 = shalt.err (!%p1900_p1)
}
  0x3e   : > { %1786 = dma.hbm_to_vmem [thread:$0]  (!%p2141_p11), %s2902_s3, 4096, %s2145_s14, [#allocation6], %s2041_s13, %s2041_s13, %s2042_s15  }
  0x3f   : > { %s1904_s20 = scalar_lea.hbm %s2904_s5, 2048 }
  0x40   : > { %p1905_p6 = scmp.ne.s32.totalorder %s2904_s5, %s1904_s20  ;;  %p1911_p5 = scmp.lt.u32.totalorder %s1904_s20, %s2904_s5 }
  0x42   : > { %p1907_p10 = pnand %p1905_p6, %p2157_p13 }
  0x44   : > { %p1908_p3 = pneg %p1907_p10 }
  0x46   : > { %p1913_p7 = pnand %p1911_p5, %p1908_p3 }
  0x48   : > { %1916 = shalt.err (!%p1913_p7)
}
  0x49   : > { %s1917_s11 = scalar_lea.vmem %s253_s16, 2048  ;;  %p1925_p2 = scmp.lt.s32.totalorder %s253_s16, %s253_s16 }
  0x4a   : > { %p1918_p9 = scmp.ne.s32.totalorder %s253_s16, %s1917_s11  ;;  %p1926_p1 = scmp.lt.s32.totalorder %s1917_s11, %s1917_s11 }
  0x4c   : > { %p1920_p12 = pnand %p1918_p9, %p2157_p13  ;;  %p1927_p4 = por %p1926_p1, %p1925_p2 }
  0x4e   : > { %p1921_p0 = pneg %p1920_p12 }
  0x50   : > { %p1928_p8 = pnand %p1927_p4, %p1921_p0 }
  0x52   : > { %1931 = shalt.err (!%p1928_p8)
}
  0x53   : > { %s2043_s14 = smov 128   ;;  %s2044_s22 = smov 8  }
  0x54   : > { %1789 = dma.hbm_to_vmem [thread:$0]  (!%p2141_p11), %s2904_s5, 2048, %s253_s16, [#allocation9], %s2043_s14, %s2043_s14, %s2044_s22  }
  0x55   : > { %s2224_s8 = sadd.s32 1, %s2036_s27   ;;  %s32_s18 = sadd.s32 1, %s2032_s26 }
  0x56   : > { %s29_s17 = ssub.s32 %s2036_s27, %s2224_s8  ;;  %p39_p8 = scmp.ne.s32.totalorder %s2032_s26, %s2028_s25 }
  0x57   : > { %p30_p4 = scmp.eq.s32.totalorder %s29_s17, 0  ;;  %p40_p13 = scmp.eq.s32.totalorder %s2036_s27, 0 }
  0x58   : > { %p1801_p6 = scmp.lt.s32.totalorder %s2036_s27, 2  ;;  %p2917_p3 = scmp.eq.s32.totalorder %s2111_s28, 1 }
  0x59   : > { %s2234_s19 = scalar_select %p30_p4, %s2032_s26, %s32_s18  }
  0x5a   : > { %p41_p10 = por %p40_p13, %p39_p8  ;;  %p2238_p5 = por %p2917_p3, %p39_p8 }
  0x5b   : > { %s269_s20 = sand.u32 1, %s2032_s26   ;;  %s1522_s21 = sshll.u32 %s2036_s27, 12 }
  0x5c   : > { %s1507_s16 = sshll.u32 %s269_s20, 8  ;;  %s2247_s10 = scalar_lea.hbm %s2899_s0, %s1522_s21 }
  0x5d   : > { %s273_s11 = scalar_lea.vmem [#allocation2], %s1507_s16  ;;  %p2249_p11 = pnand %p1801_p6, %p41_p10 }
  0x5e   : > { %s280_s13 = sshll.u32 %s273_s11, 4  ;;  %s2255_s17 = scalar_lea.sflag [#allocation3], %s269_s20  ;;  %s2253_s13 = int_to_ptr.vmem [resolvable:$true] %s280_s13 }
  0x5f   : > { %s1932_s18 = scalar_lea.hbm %s2247_s10, 4096  ;;  %p1934_p9 = pneg %p2249_p11 }
  0x60   : > { %p1933_p7 = scmp.ne.s32.totalorder %s2247_s10, %s1932_s18  ;;  %s1937_s23 = scalar_lea.hbm %s2899_s0, 8192 }
  0x61   : > { %p1938_p2 = scmp.lt.u32.totalorder %s2247_s10, %s2899_s0  ;;  %p1939_p1 = scmp.lt.u32.totalorder %s1937_s23, %s1932_s18 }
  0x62   : > { %p1935_p12 = pnand %p1934_p9, %p1933_p7  ;;  %p1941_p8 = scmp.lt.u32.totalorder %s1932_s18, %s2247_s10 }
  0x63   : > { %p1940_p4 = por %p1939_p1, %p1938_p2 }
  0x64   : > { %p1936_p0 = pneg %p1935_p12 }
  0x65   : > { %p1942_p13 = por %p1941_p8, %p1940_p4 }
  0x67   : > { %p1943_p6 = pnand %p1942_p13, %p1936_p0 }
  0x69   : > { %1946 = shalt.err (!%p1943_p6)
}
  0x6a   : > { %s1947_s20 = scalar_lea.vmem %s2253_s13, 4096  ;;  %s2045_s21 = smov [#allocation2]  }
  0x6b   : > { %p1948_p10 = scmp.ne.s32.totalorder %s2253_s13, %s1947_s20  ;;  %s1952_s16 = sshll.u32 %s2045_s21, 4  ;;  %s1953_s16 = int_to_ptr.vmem [resolvable:$false] %s1952_s16 }
  0x6c   : > { %s1954_s29 = scalar_lea.vmem %s1953_s16, 8192  ;;  %p1955_p12 = scmp.lt.s32.totalorder %s2253_s13, %s1953_s16 }
  0x6d   : > { %p1950_p3 = pnand %p1948_p10, %p1934_p9  ;;  %p1956_p2 = scmp.lt.s32.totalorder %s1954_s29, %s1947_s20 }
  0x6f   : > { %p1951_p7 = pneg %p1950_p3  ;;  %p1957_p1 = por %p1956_p2, %p1955_p12 }
  0x71   : > { %p1958_p4 = pnand %p1957_p1, %p1951_p7 }
  0x73   : > { %1961 = shalt.err (!%p1958_p4)
}
  0x74   : > { %1793 = dma.hbm_to_vmem [thread:$0]  (!%p2249_p11), %s2247_s10, 4096, %s2253_s13, %s2255_s17, %s2043_s14, %s2043_s14, %s2044_s22  }
  0x75   : > { %p2920_p9 = scmp.ne.s32.totalorder %s2914_s9, 0 }
  0x76   : > { %s2289_s18 = sand.u32 (!%p2920_p9), 1, %s2028_s25   ;;  %p2921_p0 = scmp.ne.s32.totalorder (!%p2920_p9), %s2911_s30, 0 }
  0x77   : > { %292 = sbr.rel (%p2920_p9) target bundleno = 957 (0x3bd), region = 48  ;;  %s1511_s23 = sshll.u32 (!%p2920_p9), %s2289_s18, 8 }
  0x78   : > { %s295_s11 = scalar_lea.sflag (!%p2920_p9), [#allocation3], %s2289_s18  ;;  %s2295_s15 = scalar_lea.vmem (!%p2920_p9), [#allocation2], %s1511_s23 }
  0x7e   : > { %2007 = dma.done.wait (%p2921_p0), %s295_s11, 4096  }
  0x7f   : > { %2009 = vsyncadd (%p2921_p0), %s295_s11, 4294963200  ;;  %p2922_p11 = scmp.eq.s32.totalorder %s2111_s28, 0 }
  0x81   : > { %2011 = dma.done.wait (%p2922_p11), [#allocation6], 8192   ;;  %p2923_p8 = pmov %p2922_p11 }
  0x83   : > { %2013 = vsyncadd (%p2923_p8), [#allocation6], 4294959104  ;;  %p2924_p13 = pmov %p2923_p8 }
  0x84   : > { %p2925_p6 = pmov %p2923_p8 }
  0x85   : > { %2015 = dma.done.wait (%p2924_p13), [#allocation9], 2048  }
  0x86   : > { %2017 = vsyncadd (%p2925_p6), [#allocation9], 4294965248  ;;  %v2046_v0 = vmov 0.0   ;;  %v376_v1 = vld [vmem:[#allocation5 + $0x8] sm:$0xff]  ;;  %v378_v2 = vld [vmem:[#allocation5 + $0x18] sm:$0xff]  ;;  %s2754_s17 = scalar_lea.vmem [#allocation10], %s1511_s23 }
  0x87   : > { %483 = vmatprep.mubr.f32.mxu0 %v2046_v0  ;;  %627 = vmatprep.mubr.f32.mxu1 %v2046_v0  ;;  %v375_v3 = vld [vmem:[#allocation5] sm:$0xff]  ;;  %v1652_v4 = vpack.c.bf16 %v378_v2, %v376_v1  ;;  %v377_v5 = vld [vmem:[#allocation5 + $0x10] sm:$0xff]  ;;  %v380_v6 = vld [vmem:[#allocation5 + $0x28] sm:$0xff]  ;;  %s1523_s20 = sshll.u32 %s2111_s28, 12  ;;  %s1399_s21 = sshll.u32 %s2754_s17, 4  ;;  %s2852_s21 = int_to_ptr.vmem [resolvable:$true] %s1399_s21 }
  0x88   : > { %v382_v7 = vld [vmem:[#allocation5 + $0x38] sm:$0xff]  ;;  %v1654_v8 = vpack.c.bf16 %v377_v5, %v375_v3  ;;  %v379_v10 = vld [vmem:[#allocation5 + $0x20] sm:$0xff]  ;;  %v381_v11 = vld [vmem:[#allocation5 + $0x30] sm:$0xff]  ;;  %s2850_s23 = scalar_lea.hbm %s2906_s7, %s1523_s20  ;;  %s1386_s28 = scalar_lea.sflag [#allocation4], %s2289_s18 }
  0x89   : > { %v1656_v9 = vpack.c.bf16 %v382_v7, %v380_v6  ;;  %v384_v12 = vld [vmem:[#allocation5 + $0x48] sm:$0xff]  ;;  %1653 = vmatprep.subr.bf16.mxu0 %v1652_v4  ;;  %v386_v13 = vld [vmem:[#allocation5 + $0x58] sm:$0xff]  ;;  %1748 = vmatprep.subr.bf16.mxu1 %v1652_v4  ;;  %v1658_v14 = vpack.c.bf16 %v381_v11, %v379_v10  ;;  %v383_v16 = vld [vmem:[#allocation5 + $0x40] sm:$0xff]  ;;  %s1962_s11 = scalar_lea.vmem %s2852_s21, 4096 }
  0x8a   : > { %1655 = vmatpush1.bf16.msra.mxu0 %v1654_v8  ;;  %1756 = vmatpush1.bf16.msra.mxu1 %v1654_v8  ;;  %v1660_v15 = vpack.c.bf16 %v386_v13, %v384_v12  ;;  %v385_v17 = vld [vmem:[#allocation5 + $0x50] sm:$0xff]  ;;  %v388_v18 = vld [vmem:[#allocation5 + $0x68] sm:$0xff]  ;;  %v390_v19 = vld [vmem:[#allocation5 + $0x78] sm:$0xff]  ;;  %p1963_p10 = scmp.ne.s32.totalorder %s2852_s21, %s1962_s11 }
  0x8b   : > { %1657 = vmatprep.subr.bf16.mxu0 %v1656_v9  ;;  %1749 = vmatprep.subr.bf16.mxu1 %v1656_v9  ;;  %v1662_v20 = vpack.c.bf16 %v385_v17, %v383_v16  ;;  %v1664_v21 = vpack.c.bf16 %v390_v19, %v388_v18  ;;  %v387_v22 = vld [vmem:[#allocation5 + $0x60] sm:$0xff]  ;;  %v389_v23 = vld [vmem:[#allocation5 + $0x70] sm:$0xff]  ;;  %v392_v24 = vld [vmem:[#allocation5 + $0x88] sm:$0xff] }
  0x8c   : > { %v394_v25 = vld [vmem:[#allocation5 + $0x98] sm:$0xff]  ;;  %v1666_v26 = vpack.c.bf16 %v389_v23, %v387_v22  ;;  %v391_v28 = vld [vmem:[#allocation5 + $0x80] sm:$0xff]  ;;  %v393_v29 = vld [vmem:[#allocation5 + $0x90] sm:$0xff]  ;;  %p1964_p3 = pnand %p1963_p10, %p2238_p5 }
  0x8d   : > { %v1668_v27 = vpack.c.bf16 %v394_v25, %v392_v24  ;;  %v396_v30 = vld [vmem:[#allocation5 + $0xa8] sm:$0xff]  ;;  %v398_v31 = vld [vmem:[#allocation5 + $0xb8] sm:$0xff]  ;;  %v1670_v32 = vpack.c.bf16 %v393_v29, %v391_v28  ;;  %v395_v34 = vld [vmem:[#allocation5 + $0xa0] sm:$0xff] }
  0x8e   : > { %1659 = vmatpush1.bf16.msra.mxu0 %v1658_v14  ;;  %1757 = vmatpush1.bf16.msra.mxu1 %v1658_v14  ;;  %v1672_v33 = vpack.c.bf16 %v398_v31, %v396_v30  ;;  %v397_v35 = vld [vmem:[#allocation5 + $0xb0] sm:$0xff]  ;;  %v400_v36 = vld [vmem:[#allocation5 + $0xc8] sm:$0xff]  ;;  %v402_v37 = vld [vmem:[#allocation5 + $0xd8] sm:$0xff]  ;;  %p1965_p7 = pneg %p1964_p3 }
  0x8f   : > { %1661 = vmatprep.subr.bf16.mxu0 %v1660_v15  ;;  %1750 = vmatprep.subr.bf16.mxu1 %v1660_v15  ;;  %v1674_v38 = vpack.c.bf16 %v397_v35, %v395_v34  ;;  %v1676_v39 = vpack.c.bf16 %v402_v37, %v400_v36  ;;  %v399_v40 = vld [vmem:[#allocation5 + $0xc0] sm:$0xff]  ;;  %v401_v41 = vld [vmem:[#allocation5 + $0xd0] sm:$0xff]  ;;  %v404_v42 = vld [vmem:[#allocation5 + $0xe8] sm:$0xff] }
  0x90   : > { %v406_v43 = vld [vmem:[#allocation5 + $0xf8] sm:$0xff]  ;;  %v1678_v44 = vpack.c.bf16 %v401_v41, %v399_v40  ;;  %v403_v46 = vld [vmem:[#allocation5 + $0xe0] sm:$0xff]  ;;  %v405_v47 = vld [vmem:[#allocation5 + $0xf0] sm:$0xff] }
  0x91   : > { %v1680_v45 = vpack.c.bf16 %v406_v43, %v404_v42  ;;  %v709_v48 = vld [vmem:[#allocation7 + $0x8] sm:$0xff]  ;;  %v711_v49 = vld [vmem:[#allocation7 + $0x18] sm:$0xff]  ;;  %v1682_v50 = vpack.c.bf16 %v405_v47, %v403_v46  ;;  %v708_v52 = vld [vmem:[#allocation7] sm:$0xff] }
  0x92   : > { %1663 = vmatpush1.bf16.msra.mxu0 %v1662_v20  ;;  %1758 = vmatpush1.bf16.msra.mxu1 %v1662_v20  ;;  %v1684_v51 = vpack.c.bf16 %v711_v49, %v709_v48  ;;  %v710_v53 = vld [vmem:[#allocation7 + $0x10] sm:$0xff]  ;;  %v713_v54 = vld [vmem:[#allocation7 + $0x28] sm:$0xff]  ;;  %v715_v55 = vld [vmem:[#allocation7 + $0x38] sm:$0xff] }
  0x93   : > { %1665 = vmatprep.subr.bf16.mxu0 %v1664_v21  ;;  %1751 = vmatprep.subr.bf16.mxu1 %v1664_v21  ;;  %v343_v56 = vld [vmem:[%s2295_s15] sm:$0xff]  ;;  %v1686_v58 = vpack.c.bf16 %v710_v53, %v708_v52  ;;  %v1688_v59 = vpack.c.bf16 %v715_v55, %v713_v54  ;;  %v714_v61 = vld [vmem:[#allocation7 + $0x30] sm:$0xff]  ;;  %v717_v62 = vld [vmem:[#allocation7 + $0x48] sm:$0xff] }
  0x94   : > { %v367_v57 = vld [vmem:[%s2295_s15 + $0xc0] sm:$0xff]  ;;  %v719_v63 = vld [vmem:[#allocation7 + $0x58] sm:$0xff]  ;;  %v344_v1 = vld [vmem:[%s2295_s15 + $0x8] sm:$0xff] }
  0x95   : > { %v712_v60 = vld [vmem:[#allocation7 + $0x20] sm:$0xff]  ;;  %v368_v2 = vld [vmem:[%s2295_s15 + $0xc8] sm:$0xff]  ;;  %v1692_v4 = vpack.c.bf16 %v719_v63, %v717_v62  ;;  %v718_v6 = vld [vmem:[#allocation7 + $0x50] sm:$0xff] }
  0x96   : > { %1667 = vmatpush1.bf16.msra.mxu0 %v1666_v26  ;;  %1759 = vmatpush1.bf16.msra.mxu1 %v1666_v26  ;;  %v1690_v3 = vpack.c.bf16 %v714_v61, %v712_v60  ;;  %v716_v5 = vld [vmem:[#allocation7 + $0x40] sm:$0xff]  ;;  %v721_v7 = vld [vmem:[#allocation7 + $0x68] sm:$0xff]  ;;  %v723_v8 = vld [vmem:[#allocation7 + $0x78] sm:$0xff] }
  0x97   : > { %1669 = vmatprep.subr.bf16.mxu0 %v1668_v27  ;;  %1752 = vmatprep.subr.bf16.mxu1 %v1668_v27  ;;  %v345_v9 = vld [vmem:[%s2295_s15 + $0x10] sm:$0xff]  ;;  %v1694_v11 = vpack.c.bf16 %v718_v6, %v716_v5  ;;  %v1696_v12 = vpack.c.bf16 %v723_v8, %v721_v7  ;;  %v720_v13 = vld [vmem:[#allocation7 + $0x60] sm:$0xff]  ;;  %v725_v15 = vld [vmem:[#allocation7 + $0x88] sm:$0xff] }
  0x98   : > { %v369_v10 = vld [vmem:[%s2295_s15 + $0xd0] sm:$0xff]  ;;  %v727_v16 = vld [vmem:[#allocation7 + $0x98] sm:$0xff]  ;;  %v724_v21 = vld [vmem:[#allocation7 + $0x80] sm:$0xff] }
  0x99   : > { %v722_v14 = vld [vmem:[#allocation7 + $0x70] sm:$0xff]  ;;  %v346_v17 = vld [vmem:[%s2295_s15 + $0x18] sm:$0xff]  ;;  %v1700_v20 = vpack.c.bf16 %v727_v16, %v725_v15  ;;  %v729_v23 = vld [vmem:[#allocation7 + $0xa8] sm:$0xff] }
  0x9a   : > { %1671 = vmatpush1.bf16.msra.mxu0 %v1670_v32  ;;  %1760 = vmatpush1.bf16.msra.mxu1 %v1670_v32  ;;  %v370_v18 = vld [vmem:[%s2295_s15 + $0xd8] sm:$0xff]  ;;  %v1698_v19 = vpack.c.bf16 %v722_v14, %v720_v13  ;;  %v726_v22 = vld [vmem:[#allocation7 + $0x90] sm:$0xff]  ;;  %v347_v25 = vld [vmem:[%s2295_s15 + $0x20] sm:$0xff] }
  0x9b   : > { %1673 = vmatprep.subr.bf16.mxu0 %v1672_v33  ;;  %1753 = vmatprep.subr.bf16.mxu1 %v1672_v33  ;;  %v731_v24 = vld [vmem:[#allocation7 + $0xb8] sm:$0xff]  ;;  %v371_v26 = vld [vmem:[%s2295_s15 + $0xe0] sm:$0xff]  ;;  %v1702_v27 = vpack.c.bf16 %v726_v22, %v724_v21  ;;  %v730_v30 = vld [vmem:[#allocation7 + $0xb0] sm:$0xff] }
  0x9c   : > { %v1704_v28 = vpack.c.bf16 %v731_v24, %v729_v23  ;;  %v728_v29 = vld [vmem:[#allocation7 + $0xa0] sm:$0xff]  ;;  %v733_v31 = vld [vmem:[#allocation7 + $0xc8] sm:$0xff]  ;;  %v735_v32 = vld [vmem:[#allocation7 + $0xd8] sm:$0xff] }
  0x9d   : > { %v348_v33 = vld [vmem:[%s2295_s15 + $0x28] sm:$0xff]  ;;  %v1706_v35 = vpack.c.bf16 %v730_v30, %v728_v29  ;;  %v1708_v36 = vpack.c.bf16 %v735_v32, %v733_v31  ;;  %v732_v37 = vld [vmem:[#allocation7 + $0xc0] sm:$0xff]  ;;  %v373_v40 = vld [vmem:[%s2295_s15 + $0xf0] sm:$0xff] }
  0x9e   : > { %1675 = vmatpush1.bf16.msra.mxu0 %v1674_v38  ;;  %1761 = vmatpush1.bf16.msra.mxu1 %v1674_v38  ;;  %v372_v34 = vld [vmem:[%s2295_s15 + $0xe8] sm:$0xff]  ;;  %v734_v38 = vld [vmem:[#allocation7 + $0xd0] sm:$0xff]  ;;  %v350_v42 = vld [vmem:[%s2295_s15 + $0x38] sm:$0xff] }
  0x9f   : > { %1677 = vmatprep.subr.bf16.mxu0 %v1676_v39  ;;  %1754 = vmatprep.subr.bf16.mxu1 %v1676_v39  ;;  %v349_v39 = vld [vmem:[%s2295_s15 + $0x30] sm:$0xff]  ;;  %v1710_v41 = vpack.c.bf16 %v734_v38, %v732_v37  ;;  %v374_v43 = vld [vmem:[%s2295_s15 + $0xf8] sm:$0xff]  ;;  %v355_v48 = vld [vmem:[%s2295_s15 + $0x60] sm:$0xff] }
  0xa0   : > { %v353_v46 = vld [vmem:[%s2295_s15 + $0x50] sm:$0xff]  ;;  %v354_v47 = vld [vmem:[%s2295_s15 + $0x58] sm:$0xff]  ;;  %v356_v49 = vld [vmem:[%s2295_s15 + $0x68] sm:$0xff] }
  0xa1   : > { %v359_v52 = vld [vmem:[%s2295_s15 + $0x80] sm:$0xff]  ;;  %v360_v53 = vld [vmem:[%s2295_s15 + $0x88] sm:$0xff]  ;;  %v361_v54 = vld [vmem:[%s2295_s15 + $0x90] sm:$0xff] }
  0xa2   : > { %1679 = vmatpush1.bf16.msra.mxu0 %v1678_v44  ;;  %1762 = vmatpush1.bf16.msra.mxu1 %v1678_v44  ;;  %v351_v44 = vld [vmem:[%s2295_s15 + $0x40] sm:$0xff]  ;;  %v362_v55 = vld [vmem:[%s2295_s15 + $0x98] sm:$0xff]  ;;  %v738_v62 = vld [vmem:[#allocation7 + $0xf0] sm:$0xff] }
  0xa3   : > { %1681 = vmatprep.subr.bf16.mxu0 %v1680_v45  ;;  %1755 = vmatprep.subr.bf16.mxu1 %v1680_v45  ;;  %v352_v45 = vld [vmem:[%s2295_s15 + $0x48] sm:$0xff]  ;;  %v736_v61 = vld [vmem:[#allocation7 + $0xe0] sm:$0xff]  ;;  %v1075_v15 = vld [vmem:[#allocation8 + $0x10] sm:$0xff] }
  0xa4   : > { %v1714_v63 = vpack.c.bf16 %v738_v62, %v736_v61  ;;  %v2380_v6 = vld [vmem:[%s2901_s2] sm:$0x3]  ;;  %v1074_v14 = vld [vmem:[#allocation8 + $0x8] sm:$0xff]  ;;  %v1079_v29 = vld [vmem:[#allocation8 + $0x30] sm:$0xff] }
  0xa5   : > { %v1073_v13 = vld [vmem:[#allocation8] sm:$0xff]  ;;  %v1078_v21 = vld [vmem:[#allocation8 + $0x28] sm:$0xff]  ;;  %v1080_v30 = vld [vmem:[#allocation8 + $0x38] sm:$0xff] }
  0xa6   : > { %1683 = vmatpush1.bf16.msra.mxu0 %v1682_v50  ;;  %1763 = vmatpush1.bf16.msra.mxu1 %v1682_v50  ;;  %v357_v50 = vld [vmem:[%s2295_s15 + $0x70] sm:$0xff]  ;;  %v1716_v16 = vpack.c.bf16 %v1074_v14, %v1073_v13  ;;  %v1081_v38 = vld [vmem:[#allocation8 + $0x40] sm:$0xff] }
  0xa7   : > { %1685 = vmatprep.subr.bf16.mxu1 %v1684_v51  ;;  %v358_v51 = vld [vmem:[%s2295_s15 + $0x78] sm:$0xff] }
  0xa8   : > { %1717 = vmatprep.subr.bf16.mxu0 %v1716_v16 }
  0xa9   : > { %484 = vmatmul.mubr.f32.vlgmr.msra.gmra.mrb[0].mxu0 %v343_v56  ;;  %628 = vmatmul.mubr.f32.vlgmr.msra.gmra.mrb[0].mxu1 %v367_v57  ;;  %v363_v56 = vld [vmem:[%s2295_s15 + $0xa0] sm:$0xff]  ;;  %v364_v57 = vld [vmem:[%s2295_s15 + $0xa8] sm:$0xff] }
  0xaa   : > { %489 = vmatprep.mubr.f32.mxu0 %v2046_v0  ;;  %633 = vmatprep.mubr.f32.mxu1 %v2046_v0 }
  0xab   : > { %1687 = vmatpush1.bf16.msra.mxu1 %v1686_v58  ;;  %v737_v58 = vld [vmem:[#allocation7 + $0xe8] sm:$0xff]  ;;  %1719 = vmatpush3.bf16.msra.mxu0 %v1716_v16 }
  0xac   : > { %1689 = vmatprep.subr.bf16.mxu1 %v1688_v59  ;;  %v739_v59 = vld [vmem:[#allocation7 + $0xf8] sm:$0xff] }
  0xad   : > { %490 = vmatmul.mubr.f32.gmra.mrb[2].mxu0 %v344_v1  ;;  %634 = vmatmul.mubr.f32.gmra.mrb[2].mxu1 %v368_v2  ;;  %v1712_v60 = vpack.c.bf16 %v739_v59, %v737_v58  ;;  %v365_v1 = vld [vmem:[%s2295_s15 + $0xb0] sm:$0xff]  ;;  %v366_v2 = vld [vmem:[%s2295_s15 + $0xb8] sm:$0xff]  ;;  %s2047_s15 = smov [#allocation10]  }
  0xae   : > { %495 = vmatprep.mubr.f32.mxu0 %v2046_v0  ;;  %639 = vmatprep.mubr.f32.mxu1 %v2046_v0  ;;  %s1966_s30 = sshll.u32 %s2047_s15, 4  ;;  %s1967_s30 = int_to_ptr.vmem [resolvable:$false] %s1966_s30 }
  0xaf   : > { %1691 = vmatpush1.bf16.msra.mxu1 %v1690_v3  ;;  %v409_v3 = vlaneseq  ;;  %s1968_s9 = scalar_lea.vmem %s1967_s30, 8192  ;;  %p1969_p12 = scmp.lt.s32.totalorder %s2852_s21, %s1967_s30 }
  0xb0   : > { %1693 = vmatprep.subr.bf16.mxu1 %v1692_v4  ;;  %p1970_p2 = scmp.lt.s32.totalorder %s1968_s9, %s1962_s11 }
  0xb1   : > { %496 = vmatmul.mubr.f32.gmra.mrb[4].mxu0 %v345_v9  ;;  %640 = vmatmul.mubr.f32.gmra.mrb[4].mxu1 %v369_v10  ;;  %v2374_v4 = vshrl.u32 %v409_v3, 7 }
  0xb2   : > { %501 = vmatprep.mubr.f32.mxu0 %v2046_v0  ;;  %645 = vmatprep.mubr.f32.mxu1 %v2046_v0  ;;  %p1971_p1 = por %p1970_p2, %p1969_p12 }
  0xb3   : > { %1695 = vmatpush1.bf16.msra.mxu1 %v1694_v11  ;;  %v411_v5 = vsub.s32 0, %v2374_v4 }
  0xb4   : > { %1697 = vmatprep.subr.bf16.mxu1 %v1696_v12  ;;  %p1972_p4 = pnand %p1971_p1, %p1965_p7 }
  0xb5   : > { %502 = vmatmul.mubr.f32.gmra.mrb[6].mxu0 %v346_v17  ;;  %646 = vmatmul.mubr.f32.gmra.mrb[6].mxu1 %v370_v18  ;;  %v2385_v7 = vrot.slane %v2380_v6, %v411_v5  ;;  %v1076_v17 = vld [vmem:[#allocation8 + $0x18] sm:$0xff] }
  0xb6   : > { %507 = vmatprep.mubr.f32.mxu0 %v2046_v0  ;;  %651 = vmatprep.mubr.f32.mxu1 %v2046_v0 }
  0xb7   : > { %1699 = vmatpush1.bf16.msra.mxu1 %v1698_v19  ;;  %v1720_v19 = vpack.c.bf16 %v1076_v17, %v1075_v15 }
  0xb8   : > { %1701 = vmatprep.subr.bf16.mxu1 %v1700_v20  ;;  %v1077_v20 = vld [vmem:[#allocation8 + $0x20] sm:$0xff] }
  0xb9   : > { %508 = vmatmul.mubr.f32.gmra.mrb[8].mxu0 %v347_v25  ;;  %652 = vmatmul.mubr.f32.gmra.mrb[8].mxu1 %v371_v26 }
  0xba   : > { %513 = vmatprep.mubr.f32.mxu0 %v2046_v0  ;;  %657 = vmatprep.mubr.f32.mxu1 %v2046_v0 }
  0xbb   : > { %1703 = vmatpush1.bf16.msra.mxu1 %v1702_v27  ;;  %1721 = vmatprep.subr.bf16.mxu0 %v1720_v19  ;;  %v1724_v27 = vpack.c.bf16 %v1078_v21, %v1077_v20 }
  0xbc   : > { %1705 = vmatprep.subr.bf16.mxu1 %v1704_v28  ;;  %1723 = vmatpush3.bf16.msra.mxu0 %v1720_v19 }
  0xbd   : > { %514 = vmatmul.mubr.f32.gmra.mrb[10].mxu0 %v348_v33  ;;  %658 = vmatmul.mubr.f32.gmra.mrb[10].mxu1 %v372_v34 }
  0xbe   : > { %519 = vmatprep.mubr.f32.mxu0 %v2046_v0  ;;  %663 = vmatprep.mubr.f32.mxu1 %v2046_v0 }
  0xbf   : > { %1707 = vmatpush1.bf16.msra.mxu1 %v1706_v35  ;;  %1725 = vmatprep.subr.bf16.mxu0 %v1724_v27 }
  0xc0   : > { %1709 = vmatprep.subr.bf16.mxu1 %v1708_v36  ;;  %v1728_v36 = vpack.c.bf16 %v1080_v30, %v1079_v29  ;;  %1727 = vmatpush3.bf16.msra.mxu0 %v1724_v27 }
  0xc1   : > { %520 = vmatmul.mubr.f32.gmra.mrb[12].mxu0 %v349_v39  ;;  %664 = vmatmul.mubr.f32.gmra.mrb[12].mxu1 %v373_v40  ;;  %v1082_v39 = vld [vmem:[#allocation8 + $0x48] sm:$0xff] }
  0xc2   : > { %525 = vmatprep.mubr.f32.mxu0 %v2046_v0  ;;  %669 = vmatprep.mubr.f32.mxu1 %v2046_v0 }
  0xc3   : > { %1711 = vmatpush1.bf16.msra.mxu1 %v1710_v41  ;;  %1729 = vmatprep.subr.bf16.mxu0 %v1728_v36 }
  0xc4   : > { %1713 = vmatprep.subr.bf16.mxu1 %v1712_v60  ;;  %1731 = vmatpush3.bf16.msra.mxu0 %v1728_v36 }
  0xc5   : > { %526 = vmatmul.mubr.f32.gmra.mrb[14].mxu0 %v350_v42  ;;  %670 = vmatmul.mubr.f32.gmra.mrb[14].mxu1 %v374_v43 }
  0xc6   : > { %531 = vmatprep.mubr.f32.mxu0 %v2046_v0  ;;  %816 = vmatprep.mubr.f32.mxu1 %v2046_v0 }
  0xc7   : > { %1715 = vmatpush1.bf16.msra.mxu1 %v1714_v63 }
  0xc9   : > { %532 = vmatmul.mubr.f32.gmra.mrb[16].mxu0 %v351_v44 }
  0xca   : > { %537 = vmatprep.mubr.f32.mxu0 %v2046_v0 }
  0xcd   : > { %538 = vmatmul.mubr.f32.gmra.mrb[18].mxu0 %v352_v45  ;;  %v1732_v45 = vpack.c.bf16 %v1082_v39, %v1081_v38 }
  0xce   : > { %543 = vmatprep.mubr.f32.mxu0 %v2046_v0 }
  0xcf   : > { %1733 = vmatprep.subr.bf16.mxu0 %v1732_v45 }
  0xd0   : > { %1735 = vmatpush3.bf16.msra.mxu0 %v1732_v45 }
  0xd1   : > { %544 = vmatmul.mubr.f32.gmra.mrb[20].mxu0 %v353_v46 }
  0xd2   : > { %549 = vmatprep.mubr.f32.mxu0 %v2046_v0 }
  0xd5   : > { %550 = vmatmul.mubr.f32.gmra.mrb[22].mxu0 %v354_v47  ;;  %v1083_v47 = vld [vmem:[#allocation8 + $0x50] sm:$0xff] }
  0xd6   : > { %555 = vmatprep.mubr.f32.mxu0 %v2046_v0 }
  0xd9   : > { %556 = vmatmul.mubr.f32.gmra.mrb[24].mxu0 %v355_v48  ;;  %v1084_v48 = vld [vmem:[#allocation8 + $0x58] sm:$0xff] }
  0xda   : > { %561 = vmatprep.mubr.f32.mxu0 %v2046_v0 }
  0xdd   : > { %562 = vmatmul.mubr.f32.gmra.mrb[26].mxu0 %v356_v49 }
  0xde   : > { %567 = vmatprep.mubr.f32.mxu0 %v2046_v0 }
  0xe1   : > { %568 = vmatmul.mubr.f32.gmra.mrb[28].mxu0 %v357_v50 }
  0xe2   : > { %573 = vmatprep.mubr.f32.mxu0 %v2046_v0 }
  0xe5   : > { %574 = vmatmul.mubr.f32.gmra.mrb[30].mxu0 %v358_v51 }
  0xe6   : > { %579 = vmatprep.mubr.f32.mxu0 %v2046_v0 }
  0xe9   : > { %580 = vmatmul.mubr.f32.gmra.mrb[32].mxu0 %v359_v52 }
  0xea   : > { %585 = vmatprep.mubr.f32.mxu0 %v2046_v0 }
  0xed   : > { %586 = vmatmul.mubr.f32.gmra.mrb[34].mxu0 %v360_v53 }
  0xee   : > { %591 = vmatprep.mubr.f32.mxu0 %v2046_v0 }
  0xf1   : > { %592 = vmatmul.mubr.f32.gmra.mrb[36].mxu0 %v361_v54  ;;  %v1736_v54 = vpack.c.bf16 %v1084_v48, %v1083_v47 }
  0xf2   : > { %597 = vmatprep.mubr.f32.mxu0 %v2046_v0 }
  0xf3   : > { %1737 = vmatprep.subr.bf16.mxu0 %v1736_v54 }
  0xf4   : > { %1739 = vmatpush3.bf16.msra.mxu0 %v1736_v54 }
  0xf5   : > { %598 = vmatmul.mubr.f32.gmra.mrb[38].mxu0 %v362_v55 }
  0xf6   : > { %603 = vmatprep.mubr.f32.mxu0 %v2046_v0 }
  0xf9   : > { %604 = vmatmul.mubr.f32.gmra.mrb[40].mxu0 %v363_v56 }
  0xfa   : > { %609 = vmatprep.mubr.f32.mxu0 %v2046_v0 }
  0xfd   : > { %610 = vmatmul.mubr.f32.gmra.mrb[42].mxu0 %v364_v57 }
  0xfe   : > { %615 = vmatprep.mubr.f32.mxu0 %v2046_v0 }
 0x101   : > { %616 = vmatmul.mubr.f32.gmra.mrb[44].mxu0 %v365_v1 }
 0x102   : > { %621 = vmatprep.mubr.f32.mxu0 %v2046_v0 }
 0x105   : > { %622 = vmatmul.mubr.f32.gmra.mrb[46].mxu0 %v366_v2 }
 0x17c   : > { %v485_v8 = vpop.f32.mrb[0].mxu0  ;;  %v2387_v9 = vpop.f32.mrb[0].mxu1 }
 0x17d   : > { %v486_v10 = vadd.f32 %v485_v8, %v2385_v7  ;;  %v2390_v11 = vpop.f32.mrb[1].mxu0  ;;  %v2392_v12 = vpop.f32.mrb[1].mxu1 }
 0x17f   : > { %v676_v18 = vmax.f32 %v486_v10, 0.0 }
 0x180   : > { %v491_v22 = vpop.f32.mrb[2].mxu0  ;;  %v2394_v23 = vpop.f32.mrb[2].mxu1 }
 0x181   : > { %v492_v24 = vadd.f32 %v491_v22, %v2385_v7  ;;  %v2397_v25 = vpop.f32.mrb[3].mxu0  ;;  %817 = vmatmul.mubr.f32.vlgmr.msra.gmra.mrb[16].mxu1 %v676_v18  ;;  %v2399_v26 = vpop.f32.mrb[3].mxu1 }
 0x182   : > { %822 = vmatprep.mubr.f32.mxu1 %v2046_v0 }
 0x183   : > { %v677_v28 = vmax.f32 %v492_v24, 0.0 }
 0x184   : > { %v497_v31 = vpop.f32.mrb[4].mxu0  ;;  %v2402_v32 = vpop.f32.mrb[4].mxu1 }
 0x185   : > { %v498_v33 = vadd.f32 %v497_v31, %v2385_v7  ;;  %v2405_v34 = vpop.f32.mrb[5].mxu0  ;;  %823 = vmatmul.mubr.f32.gmra.mrb[18].mxu1 %v677_v28  ;;  %v2407_v35 = vpop.f32.mrb[5].mxu1 }
 0x186   : > { %828 = vmatprep.mubr.f32.mxu1 %v2046_v0 }
 0x187   : > { %v678_v37 = vmax.f32 %v498_v33, 0.0 }
 0x188   : > { %v503_v40 = vpop.f32.mrb[6].mxu0  ;;  %v2410_v41 = vpop.f32.mrb[6].mxu1 }
 0x189   : > { %v504_v42 = vadd.f32 %v503_v40, %v2385_v7  ;;  %v2413_v43 = vpop.f32.mrb[7].mxu0  ;;  %829 = vmatmul.mubr.f32.gmra.mrb[20].mxu1 %v678_v37  ;;  %v2415_v44 = vpop.f32.mrb[7].mxu1 }
 0x18a   : > { %834 = vmatprep.mubr.f32.mxu1 %v2046_v0 }
 0x18b   : > { %v679_v46 = vmax.f32 %v504_v42, 0.0 }
 0x18c   : > { %v509_v49 = vpop.f32.mrb[8].mxu0  ;;  %v2418_v50 = vpop.f32.mrb[8].mxu1 }
 0x18d   : > { %v510_v51 = vadd.f32 %v509_v49, %v2385_v7  ;;  %v2421_v52 = vpop.f32.mrb[9].mxu0  ;;  %835 = vmatmul.mubr.f32.gmra.mrb[22].mxu1 %v679_v46  ;;  %v2423_v53 = vpop.f32.mrb[9].mxu1 }
 0x18e   : > { %840 = vmatprep.mubr.f32.mxu1 %v2046_v0 }
 0x18f   : > { %v680_v55 = vmax.f32 %v510_v51, 0.0 }
 0x190   : > { %v515_v56 = vpop.f32.mrb[10].mxu0  ;;  %v2426_v57 = vpop.f32.mrb[10].mxu1 }
 0x191   : > { %v516_v58 = vadd.f32 %v515_v56, %v2385_v7  ;;  %v2429_v59 = vpop.f32.mrb[11].mxu0  ;;  %841 = vmatmul.mubr.f32.gmra.mrb[24].mxu1 %v680_v55  ;;  %v2431_v60 = vpop.f32.mrb[11].mxu1 }
 0x192   : > { %846 = vmatprep.mubr.f32.mxu1 %v2046_v0 }
 0x193   : > { %v681_v61 = vmax.f32 %v516_v58, 0.0 }
 0x194   : > { %v521_v62 = vpop.f32.mrb[12].mxu0  ;;  %v2434_v63 = vpop.f32.mrb[12].mxu1 }
 0x195   : > { %v522_v1 = vadd.f32 %v521_v62, %v2385_v7  ;;  %v2437_v2 = vpop.f32.mrb[13].mxu0  ;;  %847 = vmatmul.mubr.f32.gmra.mrb[26].mxu1 %v681_v61  ;;  %v2439_v3 = vpop.f32.mrb[13].mxu1 }
 0x196   : > { %852 = vmatprep.mubr.f32.mxu1 %v2046_v0 }
 0x197   : > { %v682_v8 = vmax.f32 %v522_v1, 0.0 }
 0x198   : > { %v527_v10 = vpop.f32.mrb[14].mxu0  ;;  %v2442_v13 = vpop.f32.mrb[14].mxu1 }
 0x199   : > { %v528_v14 = vadd.f32 %v527_v10, %v2385_v7  ;;  %v2445_v15 = vpop.f32.mrb[15].mxu0  ;;  %853 = vmatmul.mubr.f32.gmra.mrb[28].mxu1 %v682_v8  ;;  %v2447_v16 = vpop.f32.mrb[15].mxu1 }
 0x19a   : > { %858 = vmatprep.mubr.f32.mxu1 %v2046_v0 }
 0x19b   : > { %v683_v17 = vmax.f32 %v528_v14, 0.0 }
 0x19c   : > { %v533_v18 = vpop.f32.mrb[16].mxu0 }
 0x19d   : > { %v534_v19 = vadd.f32 %v533_v18, %v2385_v7  ;;  %v2451_v20 = vpop.f32.mrb[17].mxu0  ;;  %859 = vmatmul.mubr.f32.gmra.mrb[30].mxu1 %v683_v17 }
 0x19e   : > { %864 = vmatprep.mubr.f32.mxu1 %v2046_v0 }
 0x19f   : > { %v684_v21 = vmax.f32 %v534_v19, 0.0 }
 0x1a0   : > { %v539_v22 = vpop.f32.mrb[18].mxu0 }
 0x1a1   : > { %v540_v24 = vadd.f32 %v539_v22, %v2385_v7  ;;  %v2455_v27 = vpop.f32.mrb[19].mxu0  ;;  %865 = vmatmul.mubr.f32.gmra.mrb[32].mxu1 %v684_v21 }
 0x1a2   : > { %870 = vmatprep.mubr.f32.mxu1 %v2046_v0 }
 0x1a3   : > { %v685_v28 = vmax.f32 %v540_v24, 0.0 }
 0x1a4   : > { %v545_v29 = vpop.f32.mrb[20].mxu0 }
 0x1a5   : > { %v546_v30 = vadd.f32 %v545_v29, %v2385_v7  ;;  %v2459_v31 = vpop.f32.mrb[21].mxu0  ;;  %871 = vmatmul.mubr.f32.gmra.mrb[34].mxu1 %v685_v28 }
 0x1a6   : > { %876 = vmatprep.mubr.f32.mxu1 %v2046_v0 }
 0x1a7   : > { %v686_v33 = vmax.f32 %v546_v30, 0.0 }
 0x1a8   : > { %v551_v36 = vpop.f32.mrb[22].mxu0 }
 0x1a9   : > { %v552_v37 = vadd.f32 %v551_v36, %v2385_v7  ;;  %v2463_v38 = vpop.f32.mrb[23].mxu0  ;;  %877 = vmatmul.mubr.f32.gmra.mrb[36].mxu1 %v686_v33 }
 0x1aa   : > { %882 = vmatprep.mubr.f32.mxu1 %v2046_v0 }
 0x1ab   : > { %v687_v39 = vmax.f32 %v552_v37, 0.0 }
 0x1ac   : > { %v557_v40 = vpop.f32.mrb[24].mxu0 }
 0x1ad   : > { %v558_v42 = vadd.f32 %v557_v40, %v2385_v7  ;;  %v2467_v45 = vpop.f32.mrb[25].mxu0  ;;  %883 = vmatmul.mubr.f32.gmra.mrb[38].mxu1 %v687_v39 }
 0x1ae   : > { %888 = vmatprep.mubr.f32.mxu1 %v2046_v0 }
 0x1af   : > { %v688_v46 = vmax.f32 %v558_v42, 0.0 }
 0x1b0   : > { %v563_v47 = vpop.f32.mrb[26].mxu0 }
 0x1b1   : > { %v564_v48 = vadd.f32 %v563_v47, %v2385_v7  ;;  %v2471_v49 = vpop.f32.mrb[27].mxu0  ;;  %889 = vmatmul.mubr.f32.gmra.mrb[40].mxu1 %v688_v46 }
 0x1b2   : > { %894 = vmatprep.mubr.f32.mxu1 %v2046_v0 }
 0x1b3   : > { %v689_v51 = vmax.f32 %v564_v48, 0.0 }
 0x1b4   : > { %v569_v54 = vpop.f32.mrb[28].mxu0 }
 0x1b5   : > { %v570_v55 = vadd.f32 %v569_v54, %v2385_v7  ;;  %v2475_v56 = vpop.f32.mrb[29].mxu0  ;;  %895 = vmatmul.mubr.f32.gmra.mrb[42].mxu1 %v689_v51 }
 0x1b6   : > { %900 = vmatprep.mubr.f32.mxu1 %v2046_v0 }
 0x1b7   : > { %v690_v58 = vmax.f32 %v570_v55, 0.0 }
 0x1b8   : > { %v575_v61 = vpop.f32.mrb[30].mxu0 }
 0x1b9   : > { %v576_v62 = vadd.f32 %v575_v61, %v2385_v7  ;;  %v2479_v1 = vpop.f32.mrb[31].mxu0  ;;  %901 = vmatmul.mubr.f32.gmra.mrb[44].mxu1 %v690_v58  ;;  %v1085_v58 = vld [vmem:[#allocation8 + $0x60] sm:$0xff]  ;;  %v1086_v61 = vld [vmem:[#allocation8 + $0x68] sm:$0xff] }
 0x1ba   : > { %906 = vmatprep.mubr.f32.mxu1 %v2046_v0 }
 0x1bb   : > { %v691_v8 = vmax.f32 %v576_v62, 0.0 }
 0x1bc   : > { %v581_v10 = vpop.f32.mrb[32].mxu0 }
 0x1bd   : > { %v582_v14 = vadd.f32 %v581_v10, %v2385_v7  ;;  %v2483_v17 = vpop.f32.mrb[33].mxu0  ;;  %907 = vmatmul.mubr.f32.gmra.mrb[46].mxu1 %v691_v8  ;;  %v1740_v8 = vpack.c.bf16 %v1086_v61, %v1085_v58 }
 0x1be   : > { %912 = vmatprep.mubr.f32.mxu1 %v2046_v0 }
 0x1bf   : > { %v692_v18 = vmax.f32 %v582_v14, 0.0  ;;  %1741 = vmatprep.subr.bf16.mxu0 %v1740_v8 }
 0x1c0   : > { %v587_v19 = vpop.f32.mrb[34].mxu0  ;;  %1743 = vmatpush3.bf16.msra.mxu0 %v1740_v8 }
 0x1c1   : > { %v588_v21 = vadd.f32 %v587_v19, %v2385_v7  ;;  %v2487_v22 = vpop.f32.mrb[35].mxu0  ;;  %913 = vmatmul.mubr.f32.gmra.mrb[48].mxu1 %v692_v18  ;;  %v1087_v19 = vld [vmem:[#allocation8 + $0x70] sm:$0xff] }
 0x1c2   : > { %918 = vmatprep.mubr.f32.mxu1 %v2046_v0 }
 0x1c3   : > { %v693_v24 = vmax.f32 %v588_v21, 0.0  ;;  %v1088_v21 = vld [vmem:[#allocation8 + $0x78] sm:$0xff] }
 0x1c4   : > { %v593_v28 = vpop.f32.mrb[36].mxu0 }
 0x1c5   : > { %v594_v29 = vadd.f32 %v593_v28, %v2385_v7  ;;  %v2491_v30 = vpop.f32.mrb[37].mxu0  ;;  %919 = vmatmul.mubr.f32.gmra.mrb[50].mxu1 %v693_v24  ;;  %v1744_v28 = vpack.c.bf16 %v1088_v21, %v1087_v19 }
 0x1c6   : > { %924 = vmatprep.mubr.f32.mxu1 %v2046_v0 }
 0x1c7   : > { %v694_v33 = vmax.f32 %v594_v29, 0.0  ;;  %1745 = vmatprep.subr.bf16.mxu0 %v1744_v28 }
 0x1c8   : > { %v599_v36 = vpop.f32.mrb[38].mxu0  ;;  %1747 = vmatpush3.bf16.msra.mxu0 %v1744_v28 }
 0x1c9   : > { %v600_v37 = vadd.f32 %v599_v36, %v2385_v7  ;;  %v2495_v39 = vpop.f32.mrb[39].mxu0  ;;  %925 = vmatmul.mubr.f32.gmra.mrb[52].mxu1 %v694_v33 }
 0x1ca   : > { %930 = vmatprep.mubr.f32.mxu1 %v2046_v0 }
 0x1cb   : > { %v695_v40 = vmax.f32 %v600_v37, 0.0  ;;  %v630_v37 = vadd.f32 %v2387_v9, %v2385_v7 }
 0x1cc   : > { %v605_v42 = vpop.f32.mrb[40].mxu0 }
 0x1cd   : > { %v606_v46 = vadd.f32 %v605_v42, %v2385_v7  ;;  %v2499_v47 = vpop.f32.mrb[41].mxu0  ;;  %931 = vmatmul.mubr.f32.gmra.mrb[54].mxu1 %v695_v40  ;;  %v700_v42 = vmax.f32 %v630_v37, 0.0 }
 0x1ce   : > { %936 = vmatprep.mubr.f32.mxu1 %v2046_v0 }
 0x1cf   : > { %v696_v48 = vmax.f32 %v606_v46, 0.0  ;;  %v636_v46 = vadd.f32 %v2394_v23, %v2385_v7  ;;  %v654_v23 = vadd.f32 %v2418_v50, %v2385_v7  ;;  %v672_v50 = vadd.f32 %v2442_v13, %v2385_v7 }
 0x1d0   : > { %v611_v51 = vpop.f32.mrb[42].mxu0 }
 0x1d1   : > { %v612_v54 = vadd.f32 %v611_v51, %v2385_v7  ;;  %v2503_v55 = vpop.f32.mrb[43].mxu0  ;;  %937 = vmatmul.mubr.f32.gmra.mrb[56].mxu1 %v696_v48  ;;  %v701_v48 = vmax.f32 %v636_v46, 0.0  ;;  %v642_v51 = vadd.f32 %v2402_v32, %v2385_v7  ;;  %v704_v61 = vmax.f32 %v654_v23, 0.0 }
 0x1d2   : > { %942 = vmatprep.mubr.f32.mxu1 %v2046_v0  ;;  %v660_v32 = vadd.f32 %v2426_v57, %v2385_v7  ;;  %v415_v57 = vsub.s32 1, %v2374_v4 }
 0x1d3   : > { %v697_v62 = vmax.f32 %v612_v54, 0.0  ;;  %v702_v9 = vmax.f32 %v642_v51, 0.0  ;;  %v648_v54 = vadd.f32 %v2410_v41, %v2385_v7  ;;  %v666_v41 = vadd.f32 %v2434_v63, %v2385_v7  ;;  %v740_v63 = vld [vmem:[%s2903_s4] sm:$0x3] }
 0x1d4   : > { %v617_v10 = vpop.f32.mrb[44].mxu0  ;;  %v2547_v19 = vrot.slane %v2380_v6, %v415_v57 }
 0x1d5   : > { %v618_v14 = vadd.f32 %v617_v10, %v2385_v7  ;;  %v2507_v18 = vpop.f32.mrb[45].mxu0  ;;  %943 = vmatmul.mubr.f32.gmra.mrb[58].mxu1 %v697_v62  ;;  %v703_v58 = vmax.f32 %v648_v54, 0.0  ;;  %v705_v62 = vmax.f32 %v660_v32, 0.0  ;;  %v706_v8 = vmax.f32 %v666_v41, 0.0 }
 0x1d6   : > { %948 = vmatprep.mubr.f32.mxu1 %v2046_v0  ;;  %v707_v10 = vmax.f32 %v672_v50, 0.0  ;;  %v494_v6 = vadd.f32 %v2397_v25, %v2547_v19 }
 0x1d7   : > { %v698_v24 = vmax.f32 %v618_v14, 0.0  ;;  %v2544_v14 = vrot.slane %v740_v63, %v411_v5 }
 0x1d8   : > { %v623_v29 = vpop.f32.mrb[46].mxu0 }
 0x1d9   : > { %v624_v33 = vadd.f32 %v623_v29, %v2385_v7  ;;  %v2511_v36 = vpop.f32.mrb[47].mxu0  ;;  %949 = vmatmul.mubr.f32.gmra.mrb[60].mxu1 %v698_v24  ;;  %v2549_v7 = vrot.slane %v740_v63, %v415_v57  ;;  %v488_v24 = vadd.f32 %v2390_v11, %v2547_v19  ;;  %v512_v63 = vadd.f32 %v2421_v52, %v2547_v19 }
 0x1da   : > { %954 = vmatprep.mubr.f32.mxu1 %v2046_v0 }
 0x1db   : > { %v699_v40 = vmax.f32 %v624_v33, 0.0 }
 0x1dd   : > { %955 = vmatmul.mubr.f32.gmra.mrb[62].mxu1 %v699_v40 }
 0x1de   : > { %960 = vmatprep.mubr.f32.mxu1 %v2046_v0 }
 0x1e1   : > { %961 = vmatmul.mubr.f32.gmra.mrb[64].mxu1 %v700_v42 }
 0x1e2   : > { %966 = vmatprep.mubr.f32.mxu1 %v2046_v0 }
 0x1e5   : > { %967 = vmatmul.mubr.f32.gmra.mrb[66].mxu1 %v701_v48 }
 0x1e6   : > { %972 = vmatprep.mubr.f32.mxu1 %v2046_v0 }
 0x1e9   : > { %973 = vmatmul.mubr.f32.gmra.mrb[68].mxu1 %v702_v9  ;;  %v500_v9 = vadd.f32 %v2405_v34, %v2547_v19 }
 0x1ea   : > { %978 = vmatprep.mubr.f32.mxu1 %v2046_v0 }
 0x1ed   : > { %979 = vmatmul.mubr.f32.gmra.mrb[70].mxu1 %v703_v58 }
 0x1ee   : > { %984 = vmatprep.mubr.f32.mxu1 %v2046_v0 }
 0x1f1   : > { %985 = vmatmul.mubr.f32.gmra.mrb[72].mxu1 %v704_v61 }
 0x1f2   : > { %990 = vmatprep.mubr.f32.mxu1 %v2046_v0 }
 0x1f5   : > { %991 = vmatmul.mubr.f32.gmra.mrb[74].mxu1 %v705_v62  ;;  %v506_v62 = vadd.f32 %v2413_v43, %v2547_v19 }
 0x1f6   : > { %996 = vmatprep.mubr.f32.mxu1 %v2046_v0 }
 0x1f9   : > { %997 = vmatmul.mubr.f32.gmra.mrb[76].mxu1 %v706_v8 }
 0x1fa   : > { %1002 = vmatprep.mubr.f32.mxu1 %v2046_v0 }
 0x1fd   : > { %1003 = vmatmul.mubr.f32.gmra.mrb[78].mxu1 %v707_v10 }
 0x254   : > { %v818_v13 = vpop.f32.mrb[16].mxu1 }
 0x255   : > { %v819_v21 = vadd.f32 %v818_v13, %v2544_v14  ;;  %v820_v0 = vpop.f32.mrb[17].mxu1 }
 0x256   : > { %v821_v28 = vadd.f32 %v820_v0, %v2549_v7 }
 0x257   : > { %v1041_v29 = vmax.f32 %v819_v21, 0.0 }
 0x258   : > { %v2555_v33 = vadd.f32 %v821_v28, %v488_v24  ;;  %v824_v4 = vpop.f32.mrb[18].mxu1 }
 0x259   : > { %v825_v5 = vadd.f32 %v824_v4, %v2544_v14  ;;  %v826_v37 = vpop.f32.mrb[19].mxu1  ;;  %1604 = vmatprep.mubr.f32.mxu0 %v1041_v29  ;;  %v518_v29 = vadd.f32 %v2429_v59, %v2547_v19 }
 0x25a   : > { %v827_v40 = vadd.f32 %v826_v37, %v2549_v7 }
 0x25b   : > { %v1042_v42 = vmax.f32 %v825_v5, 0.0 }
 0x25c   : > { %v2561_v46 = vadd.f32 %v827_v40, %v494_v6  ;;  %v830_v48 = vpop.f32.mrb[20].mxu1 }
 0x25d   : > { %v831_v11 = vadd.f32 %v830_v48, %v2544_v14  ;;  %v832_v51 = vpop.f32.mrb[21].mxu1  ;;  %1605 = vmatmul.mubr.f32.vlgmr.msra.gmra.mrb[48].mxu0 %v1042_v42  ;;  %v524_v42 = vadd.f32 %v2437_v2, %v2547_v19 }
 0x25e   : > { %v833_v54 = vadd.f32 %v832_v51, %v2549_v7 }
 0x25f   : > { %v1043_v58 = vmax.f32 %v831_v11, 0.0 }
 0x260   : > { %v2567_v23 = vadd.f32 %v833_v54, %v500_v9  ;;  %v836_v61 = vpop.f32.mrb[22].mxu1 }
 0x261   : > { %v837_v25 = vadd.f32 %v836_v61, %v2544_v14  ;;  %v838_v32 = vpop.f32.mrb[23].mxu1  ;;  %1607 = vmatprep.mubr.f32.mxu0 %v1043_v58  ;;  %v530_v58 = vadd.f32 %v2445_v15, %v2547_v19 }
 0x262   : > { %v839_v41 = vadd.f32 %v838_v32, %v2549_v7 }
 0x263   : > { %v1044_v8 = vmax.f32 %v837_v25, 0.0 }
 0x264   : > { %v2573_v50 = vadd.f32 %v839_v41, %v506_v62  ;;  %v842_v10 = vpop.f32.mrb[24].mxu1 }
 0x265   : > { %v843_v34 = vadd.f32 %v842_v10, %v2544_v14  ;;  %v844_v57 = vpop.f32.mrb[25].mxu1  ;;  %1608 = vmatmul.mubr.f32.gmra.mrb[50].mxu0 %v1044_v8  ;;  %v536_v8 = vadd.f32 %v2451_v20, %v2547_v19 }
 0x266   : > { %v845_v13 = vadd.f32 %v844_v57, %v2549_v7 }
 0x267   : > { %v1045_v21 = vmax.f32 %v843_v34, 0.0 }
 0x268   : > { %v2579_v0 = vadd.f32 %v845_v13, %v512_v63  ;;  %v848_v24 = vpop.f32.mrb[26].mxu1 }
 0x269   : > { %v849_v43 = vadd.f32 %v848_v24, %v2544_v14  ;;  %v850_v28 = vpop.f32.mrb[27].mxu1  ;;  %1610 = vmatprep.mubr.f32.mxu0 %v1045_v21  ;;  %v542_v21 = vadd.f32 %v2455_v27, %v2547_v19 }
 0x26a   : > { %v851_v4 = vadd.f32 %v850_v28, %v2549_v7 }
 0x26b   : > { %v1046_v5 = vmax.f32 %v849_v43, 0.0 }
 0x26c   : > { %v2585_v37 = vadd.f32 %v851_v4, %v518_v29  ;;  %v854_v6 = vpop.f32.mrb[28].mxu1 }
 0x26d   : > { %v855_v52 = vadd.f32 %v854_v6, %v2544_v14  ;;  %v856_v40 = vpop.f32.mrb[29].mxu1  ;;  %1611 = vmatmul.mubr.f32.gmra.mrb[52].mxu0 %v1046_v5  ;;  %v548_v5 = vadd.f32 %v2459_v31, %v2547_v19 }
 0x26e   : > { %v857_v48 = vadd.f32 %v856_v40, %v2549_v7 }
 0x26f   : > { %v1047_v11 = vmax.f32 %v855_v52, 0.0 }
 0x270   : > { %v2591_v51 = vadd.f32 %v857_v48, %v524_v42  ;;  %v860_v9 = vpop.f32.mrb[30].mxu1 }
 0x271   : > { %v861_v59 = vadd.f32 %v860_v9, %v2544_v14  ;;  %v862_v54 = vpop.f32.mrb[31].mxu1  ;;  %1613 = vmatprep.mubr.f32.mxu0 %v1047_v11  ;;  %v554_v11 = vadd.f32 %v2463_v38, %v2547_v19 }
 0x272   : > { %v863_v61 = vadd.f32 %v862_v54, %v2549_v7 }
 0x273   : > { %v1048_v25 = vmax.f32 %v861_v59, 0.0 }
 0x274   : > { %v2597_v32 = vadd.f32 %v863_v61, %v530_v58  ;;  %v866_v62 = vpop.f32.mrb[32].mxu1 }
 0x275   : > { %v867_v2 = vadd.f32 %v866_v62, %v2544_v14  ;;  %v868_v41 = vpop.f32.mrb[33].mxu1  ;;  %1614 = vmatmul.mubr.f32.gmra.mrb[54].mxu0 %v1048_v25  ;;  %v560_v25 = vadd.f32 %v2467_v45, %v2547_v19 }
 0x276   : > { %v869_v10 = vadd.f32 %v868_v41, %v2549_v7 }
 0x277   : > { %v1049_v34 = vmax.f32 %v867_v2, 0.0 }
 0x278   : > { %v2603_v57 = vadd.f32 %v869_v10, %v536_v8  ;;  %v872_v63 = vpop.f32.mrb[34].mxu1 }
 0x279   : > { %v873_v15 = vadd.f32 %v872_v63, %v2544_v14  ;;  %v874_v13 = vpop.f32.mrb[35].mxu1  ;;  %1616 = vmatprep.mubr.f32.mxu0 %v1049_v34  ;;  %v566_v34 = vadd.f32 %v2471_v49, %v2547_v19 }
 0x27a   : > { %v875_v24 = vadd.f32 %v874_v13, %v2549_v7 }
 0x27b   : > { %v1050_v43 = vmax.f32 %v873_v15, 0.0 }
 0x27c   : > { %v2609_v28 = vadd.f32 %v875_v24, %v542_v21  ;;  %v878_v29 = vpop.f32.mrb[36].mxu1 }
 0x27d   : > { %v879_v20 = vadd.f32 %v878_v29, %v2544_v14  ;;  %v880_v4 = vpop.f32.mrb[37].mxu1  ;;  %1617 = vmatmul.mubr.f32.gmra.mrb[56].mxu0 %v1050_v43  ;;  %v572_v43 = vadd.f32 %v2475_v56, %v2547_v19 }
 0x27e   : > { %v881_v6 = vadd.f32 %v880_v4, %v2549_v7 }
 0x27f   : > { %v1051_v52 = vmax.f32 %v879_v20, 0.0 }
 0x280   : > { %v2615_v40 = vadd.f32 %v881_v6, %v548_v5  ;;  %v884_v42 = vpop.f32.mrb[38].mxu1 }
 0x281   : > { %v885_v27 = vadd.f32 %v884_v42, %v2544_v14  ;;  %v886_v48 = vpop.f32.mrb[39].mxu1  ;;  %1619 = vmatprep.mubr.f32.mxu0 %v1051_v52  ;;  %v578_v52 = vadd.f32 %v2479_v1, %v2547_v19 }
 0x282   : > { %v887_v9 = vadd.f32 %v886_v48, %v2549_v7 }
 0x283   : > { %v1052_v59 = vmax.f32 %v885_v27, 0.0 }
 0x284   : > { %v2621_v54 = vadd.f32 %v887_v9, %v554_v11  ;;  %v890_v58 = vpop.f32.mrb[40].mxu1 }
 0x285   : > { %v891_v31 = vadd.f32 %v890_v58, %v2544_v14  ;;  %v892_v61 = vpop.f32.mrb[41].mxu1  ;;  %1620 = vmatmul.mubr.f32.gmra.mrb[58].mxu0 %v1052_v59  ;;  %v584_v59 = vadd.f32 %v2483_v17, %v2547_v19 }
 0x286   : > { %v893_v62 = vadd.f32 %v892_v61, %v2549_v7 }
 0x287   : > { %v1053_v2 = vmax.f32 %v891_v31, 0.0 }
 0x288   : > { %v2627_v41 = vadd.f32 %v893_v62, %v560_v25  ;;  %v896_v8 = vpop.f32.mrb[42].mxu1 }
 0x289   : > { %v897_v38 = vadd.f32 %v896_v8, %v2544_v14  ;;  %v898_v10 = vpop.f32.mrb[43].mxu1  ;;  %1622 = vmatprep.mubr.f32.mxu0 %v1053_v2  ;;  %v590_v2 = vadd.f32 %v2487_v22, %v2547_v19 }
 0x28a   : > { %v899_v63 = vadd.f32 %v898_v10, %v2549_v7 }
 0x28b   : > { %v1054_v15 = vmax.f32 %v897_v38, 0.0 }
 0x28c   : > { %v2633_v13 = vadd.f32 %v899_v63, %v566_v34  ;;  %v902_v21 = vpop.f32.mrb[44].mxu1 }
 0x28d   : > { %v903_v45 = vadd.f32 %v902_v21, %v2544_v14  ;;  %v904_v24 = vpop.f32.mrb[45].mxu1  ;;  %1623 = vmatmul.mubr.f32.gmra.mrb[60].mxu0 %v1054_v15  ;;  %v596_v15 = vadd.f32 %v2491_v30, %v2547_v19 }
 0x28e   : > { %v905_v29 = vadd.f32 %v904_v24, %v2549_v7 }
 0x28f   : > { %v1055_v20 = vmax.f32 %v903_v45, 0.0 }
 0x290   : > { %v2639_v4 = vadd.f32 %v905_v29, %v572_v43  ;;  %v908_v5 = vpop.f32.mrb[46].mxu1 }
 0x291   : > { %v909_v49 = vadd.f32 %v908_v5, %v2544_v14  ;;  %v910_v6 = vpop.f32.mrb[47].mxu1  ;;  %1625 = vmatprep.mubr.f32.mxu0 %v1055_v20  ;;  %v602_v20 = vadd.f32 %v2495_v39, %v2547_v19 }
 0x292   : > { %v911_v42 = vadd.f32 %v910_v6, %v2549_v7 }
 0x293   : > { %v1056_v27 = vmax.f32 %v909_v49, 0.0 }
 0x294   : > { %v2645_v48 = vadd.f32 %v911_v42, %v578_v52  ;;  %v914_v11 = vpop.f32.mrb[48].mxu1 }
 0x295   : > { %v915_v56 = vadd.f32 %v914_v11, %v2544_v14  ;;  %v916_v9 = vpop.f32.mrb[49].mxu1  ;;  %1626 = vmatmul.mubr.f32.gmra.mrb[62].mxu0 %v1056_v27  ;;  %v608_v27 = vadd.f32 %v2499_v47, %v2547_v19 }
 0x296   : > { %v917_v58 = vadd.f32 %v916_v9, %v2549_v7 }
 0x297   : > { %v1057_v31 = vmax.f32 %v915_v56, 0.0 }
 0x298   : > { %v2651_v61 = vadd.f32 %v917_v58, %v584_v59  ;;  %v920_v25 = vpop.f32.mrb[50].mxu1 }
 0x299   : > { %v921_v1 = vadd.f32 %v920_v25, %v2544_v14  ;;  %v922_v62 = vpop.f32.mrb[51].mxu1  ;;  %1628 = vmatprep.mubr.f32.mxu0 %v1057_v31  ;;  %v614_v31 = vadd.f32 %v2503_v55, %v2547_v19 }
 0x29a   : > { %v923_v8 = vadd.f32 %v922_v62, %v2549_v7 }
 0x29b   : > { %v1058_v38 = vmax.f32 %v921_v1, 0.0 }
 0x29c   : > { %v2657_v10 = vadd.f32 %v923_v8, %v590_v2  ;;  %v926_v34 = vpop.f32.mrb[52].mxu1 }
 0x29d   : > { %v927_v17 = vadd.f32 %v926_v34, %v2544_v14  ;;  %v928_v63 = vpop.f32.mrb[53].mxu1  ;;  %1629 = vmatmul.mubr.f32.gmra.mrb[64].mxu0 %v1058_v38  ;;  %v620_v38 = vadd.f32 %v2507_v18, %v2547_v19 }
 0x29e   : > { %v929_v21 = vadd.f32 %v928_v63, %v2549_v7 }
 0x29f   : > { %v1059_v45 = vmax.f32 %v927_v17, 0.0 }
 0x2a0   : > { %v2663_v24 = vadd.f32 %v929_v21, %v596_v15  ;;  %v932_v43 = vpop.f32.mrb[54].mxu1 }
 0x2a1   : > { %v933_v22 = vadd.f32 %v932_v43, %v2544_v14  ;;  %v934_v29 = vpop.f32.mrb[55].mxu1  ;;  %1631 = vmatprep.mubr.f32.mxu0 %v1059_v45  ;;  %v626_v45 = vadd.f32 %v2511_v36, %v2547_v19 }
 0x2a2   : > { %v935_v5 = vadd.f32 %v934_v29, %v2549_v7 }
 0x2a3   : > { %v1060_v49 = vmax.f32 %v933_v22, 0.0 }
 0x2a4   : > { %v2669_v6 = vadd.f32 %v935_v5, %v602_v20  ;;  %v938_v52 = vpop.f32.mrb[56].mxu1 }
 0x2a5   : > { %v939_v30 = vadd.f32 %v938_v52, %v2544_v14  ;;  %v940_v42 = vpop.f32.mrb[57].mxu1  ;;  %1632 = vmatmul.mubr.f32.gmra.mrb[66].mxu0 %v1060_v49  ;;  %v632_v49 = vadd.f32 %v2392_v12, %v2547_v19 }
 0x2a6   : > { %v941_v11 = vadd.f32 %v940_v42, %v2549_v7 }
 0x2a7   : > { %v1061_v56 = vmax.f32 %v939_v30, 0.0 }
 0x2a8   : > { %v2675_v9 = vadd.f32 %v941_v11, %v608_v27  ;;  %v944_v59 = vpop.f32.mrb[58].mxu1 }
 0x2a9   : > { %v945_v39 = vadd.f32 %v944_v59, %v2544_v14  ;;  %v946_v58 = vpop.f32.mrb[59].mxu1  ;;  %1634 = vmatprep.mubr.f32.mxu0 %v1061_v56  ;;  %v638_v56 = vadd.f32 %v2399_v26, %v2547_v19 }
 0x2aa   : > { %v947_v25 = vadd.f32 %v946_v58, %v2549_v7 }
 0x2ab   : > { %v1062_v1 = vmax.f32 %v945_v39, 0.0 }
 0x2ac   : > { %v2681_v62 = vadd.f32 %v947_v25, %v614_v31  ;;  %v950_v2 = vpop.f32.mrb[60].mxu1 }
 0x2ad   : > { %v951_v47 = vadd.f32 %v950_v2, %v2544_v14  ;;  %v952_v8 = vpop.f32.mrb[61].mxu1  ;;  %1635 = vmatmul.mubr.f32.gmra.mrb[68].mxu0 %v1062_v1  ;;  %v644_v1 = vadd.f32 %v2407_v35, %v2547_v19 }
 0x2ae   : > { %v953_v34 = vadd.f32 %v952_v8, %v2549_v7 }
 0x2af   : > { %v1063_v17 = vmax.f32 %v951_v47, 0.0 }
 0x2b0   : > { %v2687_v63 = vadd.f32 %v953_v34, %v620_v38  ;;  %v956_v15 = vpop.f32.mrb[62].mxu1 }
 0x2b1   : > { %v957_v55 = vadd.f32 %v956_v15, %v2544_v14  ;;  %v958_v21 = vpop.f32.mrb[63].mxu1  ;;  %1637 = vmatprep.mubr.f32.mxu0 %v1063_v17  ;;  %v650_v17 = vadd.f32 %v2415_v44, %v2547_v19 }
 0x2b2   : > { %v959_v43 = vadd.f32 %v958_v21, %v2549_v7 }
 0x2b3   : > { %v1064_v22 = vmax.f32 %v957_v55, 0.0 }
 0x2b4   : > { %v2693_v29 = vadd.f32 %v959_v43, %v626_v45  ;;  %v962_v20 = vpop.f32.mrb[64].mxu1 }
 0x2b5   : > { %v963_v18 = vadd.f32 %v962_v20, %v2544_v14  ;;  %v964_v5 = vpop.f32.mrb[65].mxu1  ;;  %1638 = vmatmul.mubr.f32.gmra.mrb[70].mxu0 %v1064_v22  ;;  %v656_v22 = vadd.f32 %v2423_v53, %v2547_v19 }
 0x2b6   : > { %v965_v52 = vadd.f32 %v964_v5, %v2549_v7 }
 0x2b7   : > { %v1065_v30 = vmax.f32 %v963_v18, 0.0 }
 0x2b8   : > { %v2699_v42 = vadd.f32 %v965_v52, %v632_v49  ;;  %v968_v27 = vpop.f32.mrb[66].mxu1 }
 0x2b9   : > { %v969_v36 = vadd.f32 %v968_v27, %v2544_v14  ;;  %v970_v11 = vpop.f32.mrb[67].mxu1  ;;  %1640 = vmatprep.mubr.f32.mxu0 %v1065_v30  ;;  %v662_v30 = vadd.f32 %v2431_v60, %v2547_v19 }
 0x2ba   : > { %v971_v59 = vadd.f32 %v970_v11, %v2549_v7 }
 0x2bb   : > { %v1066_v39 = vmax.f32 %v969_v36, 0.0 }
 0x2bc   : > { %v2705_v58 = vadd.f32 %v971_v59, %v638_v56  ;;  %v974_v31 = vpop.f32.mrb[68].mxu1 }
 0x2bd   : > { %v975_v12 = vadd.f32 %v974_v31, %v2544_v14  ;;  %v976_v25 = vpop.f32.mrb[69].mxu1  ;;  %1641 = vmatmul.mubr.f32.gmra.mrb[72].mxu0 %v1066_v39  ;;  %v668_v39 = vadd.f32 %v2439_v3, %v2547_v19  ;;  %v2746_v3 = vld [vmem:[%s2905_s6] ss:$0 sm:$0xff] }
 0x2be   : > { %v977_v2 = vadd.f32 %v976_v25, %v2549_v7 }
 0x2bf   : > { %v1067_v47 = vmax.f32 %v975_v12, 0.0 }
 0x2c0   : > { %v2711_v8 = vadd.f32 %v977_v2, %v644_v1  ;;  %v980_v38 = vpop.f32.mrb[70].mxu1 }
 0x2c1   : > { %v981_v26 = vadd.f32 %v980_v38, %v2544_v14  ;;  %v982_v34 = vpop.f32.mrb[71].mxu1  ;;  %1643 = vmatprep.mubr.f32.mxu0 %v1067_v47  ;;  %v674_v47 = vadd.f32 %v2447_v16, %v2547_v19 }
 0x2c2   : > { %v983_v15 = vadd.f32 %v982_v34, %v2549_v7 }
 0x2c3   : > { %v1068_v55 = vmax.f32 %v981_v26, 0.0 }
 0x2c4   : > { %v2717_v21 = vadd.f32 %v983_v15, %v650_v17  ;;  %v986_v45 = vpop.f32.mrb[72].mxu1 }
 0x2c5   : > { %v987_v35 = vadd.f32 %v986_v45, %v2544_v14  ;;  %v988_v43 = vpop.f32.mrb[73].mxu1  ;;  %1644 = vmatmul.mubr.f32.gmra.mrb[74].mxu0 %v1068_v55 }
 0x2c6   : > { %v989_v20 = vadd.f32 %v988_v43, %v2549_v7 }
 0x2c7   : > { %v1069_v18 = vmax.f32 %v987_v35, 0.0 }
 0x2c8   : > { %v2723_v5 = vadd.f32 %v989_v20, %v656_v22  ;;  %v992_v49 = vpop.f32.mrb[74].mxu1 }
 0x2c9   : > { %v993_v44 = vadd.f32 %v992_v49, %v2544_v14  ;;  %v994_v52 = vpop.f32.mrb[75].mxu1  ;;  %1646 = vmatprep.mubr.f32.mxu0 %v1069_v18 }
 0x2ca   : > { %v995_v27 = vadd.f32 %v994_v52, %v2549_v7 }
 0x2cb   : > { %v1070_v36 = vmax.f32 %v993_v44, 0.0 }
 0x2cc   : > { %v2729_v11 = vadd.f32 %v995_v27, %v662_v30  ;;  %v998_v56 = vpop.f32.mrb[76].mxu1 }
 0x2cd   : > { %v999_v53 = vadd.f32 %v998_v56, %v2544_v14  ;;  %v1000_v59 = vpop.f32.mrb[77].mxu1  ;;  %1647 = vmatmul.mubr.f32.gmra.mrb[76].mxu0 %v1070_v36 }
 0x2ce   : > { %v1001_v31 = vadd.f32 %v1000_v59, %v2549_v7 }
 0x2cf   : > { %v1071_v12 = vmax.f32 %v999_v53, 0.0 }
 0x2d0   : > { %v2735_v25 = vadd.f32 %v1001_v31, %v668_v39  ;;  %v1004_v1 = vpop.f32.mrb[78].mxu1 }
 0x2d1   : > { %v1005_v60 = vadd.f32 %v1004_v1, %v2544_v14  ;;  %v1006_v2 = vpop.f32.mrb[79].mxu1  ;;  %1649 = vmatprep.mubr.f32.mxu0 %v1071_v12 }
 0x2d2   : > { %v1007_v38 = vadd.f32 %v1006_v2, %v2549_v7 }
 0x2d3   : > { %v1072_v26 = vmax.f32 %v1005_v60, 0.0 }
 0x2d4   : > { %v2741_v34 = vadd.f32 %v1007_v38, %v674_v47 }
 0x2d5   : > { %1650 = vmatmul.mubr.f32.gmra.mrb[78].mxu0 %v1072_v26 }
 0x330   : > { %v1606_v17 = vpop.f32.mrb[48].mxu0 }
 0x331   : > { %v1168_v15 = vadd.f32 %v1606_v17, %v2746_v3  ;;  %v1162_v14 = vpop.f32.mrb[49].mxu0 }
 0x332   : > { %v1163_v55 = vadd.f32 %v2746_v3, %v1162_v14 }
 0x333   : > { %v1322_v45 = vadd.f32 %v1168_v15, %v2561_v46 }
 0x334   : > { %v1321_v16 = vadd.f32 %v1163_v55, %v2555_v33 }
 0x335   : > { %1354 = vst [vmem:[%s2754_s17 + $0x8] sm:$0xff] %v1322_v45 }
 0x336   : > { %1353 = vst [vmem:[%s2754_s17] sm:$0xff] %v1321_v16 }
 0x338   : > { %v1609_v19 = vpop.f32.mrb[50].mxu0 }
 0x339   : > { %v1178_v7 = vadd.f32 %v1609_v19, %v2746_v3  ;;  %v1172_v35 = vpop.f32.mrb[51].mxu0 }
 0x33a   : > { %v1173_v43 = vadd.f32 %v2746_v3, %v1172_v35 }
 0x33b   : > { %v1324_v46 = vadd.f32 %v1178_v7, %v2573_v50 }
 0x33c   : > { %v1323_v33 = vadd.f32 %v1173_v43, %v2567_v23 }
 0x33d   : > { %1356 = vst [vmem:[%s2754_s17 + $0x18] sm:$0xff] %v1324_v46 }
 0x33e   : > { %1355 = vst [vmem:[%s2754_s17 + $0x10] sm:$0xff] %v1323_v33 }
 0x340   : > { %v1612_v22 = vpop.f32.mrb[52].mxu0 }
 0x341   : > { %v1188_v20 = vadd.f32 %v1612_v22, %v2746_v3  ;;  %v1182_v18 = vpop.f32.mrb[53].mxu0 }
 0x342   : > { %v1183_v49 = vadd.f32 %v2746_v3, %v1182_v18 }
 0x343   : > { %v1326_v44 = vadd.f32 %v1188_v20, %v2585_v37 }
 0x344   : > { %v1325_v52 = vadd.f32 %v1183_v49, %v2579_v0 }
 0x345   : > { %1358 = vst [vmem:[%s2754_s17 + $0x28] sm:$0xff] %v1326_v44 }
 0x346   : > { %1357 = vst [vmem:[%s2754_s17 + $0x20] sm:$0xff] %v1325_v52 }
 0x348   : > { %v1615_v50 = vpop.f32.mrb[54].mxu0 }
 0x349   : > { %v1198_v23 = vadd.f32 %v1615_v50, %v2746_v3  ;;  %v1192_v30 = vpop.f32.mrb[55].mxu0 }
 0x34a   : > { %v1193_v27 = vadd.f32 %v2746_v3, %v1192_v30 }
 0x34b   : > { %v1328_v36 = vadd.f32 %v1198_v23, %v2597_v32 }
 0x34c   : > { %v1327_v56 = vadd.f32 %v1193_v27, %v2591_v51 }
 0x34d   : > { %1360 = vst [vmem:[%s2754_s17 + $0x38] sm:$0xff] %v1328_v36 }
 0x34e   : > { %1359 = vst [vmem:[%s2754_s17 + $0x30] sm:$0xff] %v1327_v56 }
 0x350   : > { %v1618_v37 = vpop.f32.mrb[56].mxu0 }
 0x351   : > { %v1208_v0 = vadd.f32 %v1618_v37, %v2746_v3  ;;  %v1202_v53 = vpop.f32.mrb[57].mxu0 }
 0x352   : > { %v1203_v59 = vadd.f32 %v2746_v3, %v1202_v53 }
 0x353   : > { %v1330_v39 = vadd.f32 %v1208_v0, %v2609_v28 }
 0x354   : > { %v1329_v31 = vadd.f32 %v1203_v59, %v2603_v57 }
 0x355   : > { %1362 = vst [vmem:[%s2754_s17 + $0x48] sm:$0xff] %v1330_v39 }
 0x356   : > { %1361 = vst [vmem:[%s2754_s17 + $0x40] sm:$0xff] %v1329_v31 }
 0x358   : > { %v1621_v32 = vpop.f32.mrb[58].mxu0 }
 0x359   : > { %v1218_v51 = vadd.f32 %v1621_v32, %v2746_v3  ;;  %v1212_v12 = vpop.f32.mrb[59].mxu0 }
 0x35a   : > { %v1213_v1 = vadd.f32 %v2746_v3, %v1212_v12 }
 0x35b   : > { %v1332_v60 = vadd.f32 %v1218_v51, %v2621_v54 }
 0x35c   : > { %v1331_v2 = vadd.f32 %v1213_v1, %v2615_v40 }
 0x35d   : > { %1364 = vst [vmem:[%s2754_s17 + $0x58] sm:$0xff] %v1332_v60 }
 0x35e   : > { %1363 = vst [vmem:[%s2754_s17 + $0x50] sm:$0xff] %v1331_v2 }
 0x360   : > { %v1624_v28 = vpop.f32.mrb[60].mxu0 }
 0x361   : > { %v1228_v57 = vadd.f32 %v1624_v28, %v2746_v3  ;;  %v1222_v47 = vpop.f32.mrb[61].mxu0 }
 0x362   : > { %v1223_v38 = vadd.f32 %v2746_v3, %v1222_v47 }
 0x363   : > { %v1334_v26 = vadd.f32 %v1228_v57, %v2633_v13 }
 0x364   : > { %v1333_v17 = vadd.f32 %v1223_v38, %v2627_v41 }
 0x365   : > { %1366 = vst [vmem:[%s2754_s17 + $0x68] sm:$0xff] %v1334_v26 }
 0x366   : > { %1365 = vst [vmem:[%s2754_s17 + $0x60] sm:$0xff] %v1333_v17 }
 0x368   : > { %v1627_v54 = vpop.f32.mrb[62].mxu0 }
 0x369   : > { %v1238_v40 = vadd.f32 %v1627_v54, %v2746_v3  ;;  %v1232_v15 = vpop.f32.mrb[63].mxu0 }
 0x36a   : > { %v1233_v14 = vadd.f32 %v2746_v3, %v1232_v15 }
 0x36b   : > { %v1336_v55 = vadd.f32 %v1238_v40, %v2645_v48 }
 0x36c   : > { %v1335_v45 = vadd.f32 %v1233_v14, %v2639_v4 }
 0x36d   : > { %1368 = vst [vmem:[%s2754_s17 + $0x78] sm:$0xff] %v1336_v55 }
 0x36e   : > { %1367 = vst [vmem:[%s2754_s17 + $0x70] sm:$0xff] %v1335_v45 }
 0x370   : > { %v1630_v13 = vpop.f32.mrb[64].mxu0 }
 0x371   : > { %v1248_v41 = vadd.f32 %v1630_v13, %v2746_v3  ;;  %v1242_v16 = vpop.f32.mrb[65].mxu0 }
 0x372   : > { %v1243_v19 = vadd.f32 %v2746_v3, %v1242_v16 }
 0x373   : > { %v1338_v7 = vadd.f32 %v1248_v41, %v2657_v10 }
 0x374   : > { %v1337_v35 = vadd.f32 %v1243_v19, %v2651_v61 }
 0x375   : > { %1370 = vst [vmem:[%s2754_s17 + $0x88] sm:$0xff] %v1338_v7 }
 0x376   : > { %1369 = vst [vmem:[%s2754_s17 + $0x80] sm:$0xff] %v1337_v35 }
 0x378   : > { %v1633_v48 = vpop.f32.mrb[66].mxu0 }
 0x379   : > { %v1258_v4 = vadd.f32 %v1633_v48, %v2746_v3  ;;  %v1252_v43 = vpop.f32.mrb[67].mxu0 }
 0x37a   : > { %v1253_v46 = vadd.f32 %v2746_v3, %v1252_v43 }
 0x37b   : > { %v1340_v33 = vadd.f32 %v1258_v4, %v2669_v6 }
 0x37c   : > { %v1339_v22 = vadd.f32 %v1253_v46, %v2663_v24 }
 0x37d   : > { %1372 = vst [vmem:[%s2754_s17 + $0x98] sm:$0xff] %v1340_v33 }
 0x37e   : > { %1371 = vst [vmem:[%s2754_s17 + $0x90] sm:$0xff] %v1339_v22 }
 0x380   : > { %v1636_v10 = vpop.f32.mrb[68].mxu0 }
 0x381   : > { %v1268_v61 = vadd.f32 %v1636_v10, %v2746_v3  ;;  %v1262_v20 = vpop.f32.mrb[69].mxu0 }
 0x382   : > { %v1263_v18 = vadd.f32 %v2746_v3, %v1262_v20 }
 0x383   : > { %v1342_v49 = vadd.f32 %v1268_v61, %v2681_v62 }
 0x384   : > { %v1341_v44 = vadd.f32 %v1263_v18, %v2675_v9 }
 0x385   : > { %1374 = vst [vmem:[%s2754_s17 + $0xa8] sm:$0xff] %v1342_v49 }
 0x386   : > { %1373 = vst [vmem:[%s2754_s17 + $0xa0] sm:$0xff] %v1341_v44 }
 0x388   : > { %v1639_v6 = vpop.f32.mrb[70].mxu0 }
 0x389   : > { %v1278_v24 = vadd.f32 %v1639_v6, %v2746_v3  ;;  %v1272_v52 = vpop.f32.mrb[71].mxu0 }
 0x38a   : > { %v1273_v50 = vadd.f32 %v2746_v3, %v1272_v52 }
 0x38b   : > { %v1344_v23 = vadd.f32 %v1278_v24, %v2693_v29 }
 0x38c   : > { %v1343_v30 = vadd.f32 %v1273_v50, %v2687_v63 }
 0x38d   : > { %1376 = vst [vmem:[%s2754_s17 + $0xb8] sm:$0xff] %v1344_v23 }
 0x38e   : > { %1375 = vst [vmem:[%s2754_s17 + $0xb0] sm:$0xff] %v1343_v30 }
 0x390   : > { %v1642_v62 = vpop.f32.mrb[72].mxu0 }
 0x391   : > { %v1288_v9 = vadd.f32 %v1642_v62, %v2746_v3  ;;  %v1282_v27 = vpop.f32.mrb[73].mxu0 }
 0x392   : > { %v1283_v36 = vadd.f32 %v2746_v3, %v1282_v27 }
 0x393   : > { %v1346_v56 = vadd.f32 %v1288_v9, %v2705_v58 }
 0x394   : > { %v1345_v37 = vadd.f32 %v1283_v36, %v2699_v42 }
 0x395   : > { %1378 = vst [vmem:[%s2754_s17 + $0xc8] sm:$0xff] %v1346_v56 }
 0x396   : > { %1377 = vst [vmem:[%s2754_s17 + $0xc0] sm:$0xff] %v1345_v37 }
 0x398   : > { %v1645_v29 = vpop.f32.mrb[74].mxu0 }
 0x399   : > { %v1298_v63 = vadd.f32 %v1645_v29, %v2746_v3  ;;  %v1292_v0 = vpop.f32.mrb[75].mxu0 }
 0x39a   : > { %v1293_v53 = vadd.f32 %v2746_v3, %v1292_v0 }
 0x39b   : > { %v1348_v59 = vadd.f32 %v1298_v63, %v2717_v21 }
 0x39c   : > { %v1347_v39 = vadd.f32 %v1293_v53, %v2711_v8 }
 0x39d   : > { %1380 = vst [vmem:[%s2754_s17 + $0xd8] sm:$0xff] %v1348_v59 }
 0x39e   : > { %1379 = vst [vmem:[%s2754_s17 + $0xd0] sm:$0xff] %v1347_v39 }
 0x3a0   : > { %v1648_v58 = vpop.f32.mrb[76].mxu0 }
 0x3a1   : > { %v1308_v42 = vadd.f32 %v1648_v58, %v2746_v3  ;;  %v1302_v31 = vpop.f32.mrb[77].mxu0 }
 0x3a2   : > { %v1303_v32 = vadd.f32 %v2746_v3, %v1302_v31 }
 0x3a3   : > { %v1350_v51 = vadd.f32 %v1308_v42, %v2729_v11 }
 0x3a4   : > { %v1349_v12 = vadd.f32 %v1303_v32, %v2723_v5 }
 0x3a5   : > { %1382 = vst [vmem:[%s2754_s17 + $0xe8] sm:$0xff] %v1350_v51 }
 0x3a6   : > { %1381 = vst [vmem:[%s2754_s17 + $0xe0] sm:$0xff] %v1349_v12 }
 0x3a8   : > { %v1651_v21 = vpop.f32.mrb[78].mxu0 }
 0x3a9   : > { %v1318_v8 = vadd.f32 %v1651_v21, %v2746_v3  ;;  %v1312_v1 = vpop.f32.mrb[79].mxu0 }
 0x3aa   : > { %v1313_v60 = vadd.f32 %v2746_v3, %v1312_v1 }
 0x3ab   : > { %v1352_v2 = vadd.f32 %v1318_v8, %v2741_v34 }
 0x3ac   : > { %v1351_v5 = vadd.f32 %v1313_v60, %v2735_v25 }
 0x3ad   : > { %1384 = vst [vmem:[%s2754_s17 + $0xf8] sm:$0xff] %v1352_v2 }
 0x3ae   : > { %1383 = vst [vmem:[%s2754_s17 + $0xf0] sm:$0xff] %v1351_v5 }
 0x3af   : > { %1975 = shalt.err (!%p1972_p4)
}
 0x3b0   : > { %s1976_s14 = scalar_lea.hbm %s2850_s23, 4096  ;;  %s1980_s13 = scalar_lea.hbm %s2906_s7, 8192 }
 0x3b1   : > { %p1977_p9 = scmp.ne.s32.totalorder %s2850_s23, %s1976_s14  ;;  %p1981_p8 = scmp.lt.u32.totalorder %s2850_s23, %s2906_s7 }
 0x3b2   : > { %p1982_p13 = scmp.lt.u32.totalorder %s1980_s13, %s1976_s14  ;;  %p1984_p10 = scmp.lt.u32.totalorder %s1976_s14, %s2850_s23 }
 0x3b3   : > { %p1978_p0 = pnand %p1977_p9, %p2238_p5 }
 0x3b4   : > { %p1983_p6 = por %p1982_p13, %p1981_p8 }
 0x3b5   : > { %p1979_p11 = pneg %p1978_p0 }
 0x3b6   : > { %p1985_p3 = por %p1984_p10, %p1983_p6 }
 0x3b8   : > { %p1986_p7 = pnand %p1985_p3, %p1979_p11 }
 0x3ba   : > { %1989 = shalt.err (!%p1986_p7)
}
 0x3bb   : > { %s2048_s16 = smov 128   ;;  %s2049_s29 = smov 8  }
 0x3bc   : > { %1778 = dma.vmem_to_hbm [thread:$0]  (%p2238_p5), %s2852_s21, 4096, %s2850_s23, %s1386_s28, %s2048_s16, %s2048_s16, %s2049_s29  }
 0x3bd PF: > { %s2926_s11 = sld [smem:[#allocation15_spill]]  ;;  %s1414_s15 = sand.u32 1, %s2024_s24  }
 0x3be   : > { %p2928_p2 = scmp.ge.s32.totalorder %s2036_s27, 2  ;;  %s1415_s30 = scalar_lea.sflag [#allocation4], %s1414_s15 }
 0x3c3   : > { %p2927_p12 = scmp.ne.s32.totalorder %s2926_s11, 0 }
 0x3c5   : > { %p1795_p1 = pnand %p2928_p2, %p2927_p12 }
 0x3c7   : > { %2019 = dma.done.wait (!%p1795_p1), %s1415_s30, 4096  }
 0x3c8   : > { %2021 = vsyncadd (!%p1795_p1), %s1415_s30, 4294963200  ;;  %p22_p4 = scmp.ge.s32.totalorder %s2224_s8, 4   ;;  %s2929_s24 = smov %s2028_s25 }
 0x3c9   : > { %s2930_s25 = smov %s2032_s26  ;;  %s2931_s26 = smov %s2234_s19 }
 0x3ca   : > { %s2932_s27 = smov %s2224_s8  ;;  %24 = sbr.rel (!%p22_p4) target bundleno = 7 (0x7), region = 105 }
 0x3d1   :  { %1420 = vsyncpa [#allocation3], 1 }
 0x3d2   :  { %1422 = vsyncpa [#allocation3 + $0x1], 1 }
 0x3d3   :  { %1423 = vsyncpa [#allocation6], 1 }
 0x3d4   :  { %1424 = vsyncpa [#allocation9], 1 }
 0x3d5   :  { %1425 = vsyncpa [#allocation4], 1 }
 0x3d6   :  { %1427 = vsyncpa [#allocation4 + $0x1], 1 }

</bundles_post_ra>
